<compile_context>
chip_gen: v7x
topology: tpu7x:2x2x1
jax: 0.10.0
libtpu: 0.0.40
codegen_flags: <defaults>
</compile_context>

<pallas_src>
import numpy as np
import jax
import jax.numpy as jnp
from jax.experimental import pallas as pl
from jax.experimental.pallas import tpu as pltpu


# ------------------------- module-equivalent helpers -------------------------

def isPrime(n):
    # NOTE: faithfully replicates the (buggy) reference implementation,
    # including the i*i < n bound, so cache sizes match the PyTorch module.
    if n == 1 or n == 2:
        return False
    i = 3
    while i * i < n:
        if n % i == 0:
            return False
        i += 1
    return True


def find_next_prime(max_cache_size):
    for i in range(max_cache_size, 2 * max_cache_size):
        if isPrime(i):
            return i


def _round_up(x, mult):
    return ((x + mult - 1) // mult) * mult


# ------------------------------ fused Pallas kernel ---------------------------

def _make_kernel(L, L_pad, B, B_pad, m):
    """Build the fused gather + aux-writeback + EmbeddingBag(sum) kernel.

    Kernel refs (in order):
      src_ref  (T, L_pad) i32 SMEM : global row to gather (cache row for hits,
                                     backing row for misses)
      miss_ref (T, L_pad) i32 SMEM : 1 = miss (gather from backing), 0 = hit
      wb_ref   (T, L_pad) i32 SMEM : global aux-slot row to write back, -1 = skip
      off_ref  (T, B)     i32 SMEM : EmbeddingBag offsets
      cache_in  (R_cache, m) f32 HBM (pl.ANY)
      back_in   (R_back,  m) f32 HBM (pl.ANY)
      cache_out (R_cache, m) f32 HBM (pl.ANY), aliased with cache_in
      out_ref   (B_pad, m)   f32 VMEM block (table t of the pooled output)
      gbuf (L_pad, m) f32 VMEM scratch; gsem/wsem DMA semaphores
    """

    def kernel(src_ref, miss_ref, wb_ref, off_ref,
               cache_in, back_in,
               cache_out, out_ref,
               gbuf, gsem, wsem):
        t = pl.program_id(0)

        # -- 1) issue one row-gather DMA per lookup: cache row for hits,
        #       backing row for misses (misses never read a stale aux slot).
        for i in range(L_pad):
            row = src_ref[t, i]

            @pl.when(miss_ref[t, i] == 1)
            def _(row=row, i=i):
                pltpu.make_async_copy(back_in.at[pl.ds(row, 1), :],
                                      gbuf.at[pl.ds(i, 1), :],
                                      gsem.at[i]).start()

            @pl.when(miss_ref[t, i] == 0)
            def _(row=row, i=i):
                pltpu.make_async_copy(cache_in.at[pl.ds(row, 1), :],
                                      gbuf.at[pl.ds(i, 1), :],
                                      gsem.at[i]).start()

        # -- 2) wait each gather; for misses, start the in-place aux write-back
        #       (VMEM row -> aux slot of the aliased cache table in HBM).
        for i in range(L_pad):
            pltpu.make_async_copy(cache_in.at[pl.ds(0, 1), :],
                                  gbuf.at[pl.ds(i, 1), :],
                                  gsem.at[i]).wait()
            dst = wb_ref[t, i]

            @pl.when(dst >= 0)
            def _(dst=dst, i=i):
                pltpu.make_async_copy(gbuf.at[pl.ds(i, 1), :],
                                      cache_out.at[pl.ds(dst, 1), :],
                                      wsem.at[i]).start()

        # -- 3) bag assignment from offsets (SMEM) + segment-sum on the MXU.
        lane = jax.lax.broadcasted_iota(jnp.int32, (1, L_pad), 1)      # lookup id
        bag = jnp.full((1, L_pad), -1, dtype=jnp.int32)
        for b in range(B):
            bag = bag + (lane >= off_ref[t, b]).astype(jnp.int32)
        valid = lane < L                                               # mask pad lookups
        sub = jax.lax.broadcasted_iota(jnp.int32, (B_pad, L_pad), 0)   # bag id
        S = jnp.logical_and(bag == sub, valid).astype(jnp.float32)     # (B_pad, L_pad)
        out_ref[...] = jnp.dot(S, gbuf[...], preferred_element_type=jnp.float32)

        # -- 4) drain the write-backs before this grid step finishes.
        for i in range(L_pad):
            @pl.when(wb_ref[t, i] >= 0)
            def _(i=i):
                pltpu.make_async_copy(gbuf.at[pl.ds(i, 1), :],
                                      cache_out.at[pl.ds(0, 1), :],
                                      wsem.at[i]).wait()

    return kernel


def fused_cache_embedding_bag(src_rows, miss_flags, wb_rows, offsets,
                              cache_cat, backing_cat, *, L, B, B_pad):
    """One pallas_call covering all tables: gather + aux writeback + bag-sum."""
    T, L_pad = src_rows.shape
    R_cache, m = cache_cat.shape

    grid_spec = pltpu.PrefetchScalarGridSpec(
        num_scalar_prefetch=4,
        grid=(T,),
        in_specs=[
            pl.BlockSpec(memory_space=pl.ANY),     # cache table stays in HBM
            pl.BlockSpec(memory_space=pl.ANY),     # backing table stays in HBM
        ],
        out_specs=(
            pl.BlockSpec(memory_space=pl.ANY),     # updated cache (aliased, HBM)
            pl.BlockSpec((None, B_pad, m), lambda t, *_: (t, 0, 0)),  # lane-dense
        ),
        scratch_shapes=[
            pltpu.VMEM((L_pad, m), jnp.float32),   # gathered rows
            pltpu.SemaphoreType.DMA((L_pad,)),     # gather semaphores
            pltpu.SemaphoreType.DMA((L_pad,)),     # write-back semaphores
        ],
    )

    cache_new, pooled = pl.pallas_call(
        _make_kernel(L, L_pad, B, B_pad, m),
        grid_spec=grid_spec,
        out_shape=(
            jax.ShapeDtypeStruct((R_cache, m), jnp.float32),
            jax.ShapeDtypeStruct((T, B_pad, m), jnp.float32),
        ),
        # cache_cat is call-arg index 4 (after the 4 scalar-prefetch operands);
        # aliasing it with output 0 makes the aux write-back truly in place.
        input_output_aliases={4: 0},
        compiler_params=pltpu.CompilerParams(
            dimension_semantics=("parallel",),     # tables independent -> megacore
        ),
    )(src_rows, miss_flags, wb_rows, offsets, cache_cat, backing_cat)
    return cache_new, pooled


# --------------------------- JAX "module" wrapper -----------------------------

class EmbeddingTableCacheGroup:
    """JAX/Pallas port of Embedding_Table_Cache_Group (forward pass only)."""

    def __init__(self, m_spa, ln_emb, max_cache_size, aux_table_size, num_ways, key):
        self.m = int(m_spa)
        self.ln_emb = [int(n) for n in np.asarray(ln_emb)]
        self.num_ways = int(num_ways)
        self.aux_table_size = int(aux_table_size)
        self.max_cache_size = find_next_prime(max_cache_size)

        self.cache_sizes = []
        rows_per_table = []
        for n in self.ln_emb:
            num_rows = n if n < self.max_cache_size else self.max_cache_size
            self.cache_sizes.append(num_rows)
            rows_per_table.append(self.num_ways * num_rows + self.aux_table_size)
        self.cache_base = np.concatenate([[0], np.cumsum(rows_per_table)]).astype(np.int64)
        self.back_base = np.concatenate([[0], np.cumsum(self.ln_emb)]).astype(np.int64)

        # All per-table cache weights in ONE concatenated (R_total, m) array.
        # nn.EmbeddingBag default init: Normal(0, 1), deterministic here.
        total_rows = int(self.cache_base[-1])
        self.emb_cat = jax.random.normal(key, (total_rows, self.m), jnp.float32)

        # Occupancy tables, (cache_size, num_ways) int32, -1 == empty.
        self.occupancy_tables = [
            -jnp.ones((cs, self.num_ways), dtype=jnp.int32) for cs in self.cache_sizes
        ]
        self.victim_cache_entries = [None] * len(self.cache_sizes)

        # jit the glue + kernel; donate the cache table so the aliased Pallas
        # output reuses its HBM buffer (no full-table copy per forward).
        self._fwd = jax.jit(self._forward_impl, donate_argnums=(0,))

    # --- occupancy helpers -----------------------------------------------
    def warm(self, table_idx, warm_indices):
        """Insert backing-table indices into way 0 so forward() hits them."""
        occ = self.occupancy_tables[table_idx]
        cs = self.cache_sizes[table_idx]
        for v in np.asarray(warm_indices):
            occ = occ.at[int(v) % cs, 0].set(int(v))
        self.occupancy_tables[table_idx] = occ

    def get_table_weight(self, k):
        lo, hi = int(self.cache_base[k]), int(self.cache_base[k + 1])
        return self.emb_cat[lo:hi]

    # --- forward ------------------------------------------------------------
    def _forward_impl(self, cache_cat, backing_cat, occ_tables, idx_mat, off_mat):
        T, L = idx_mat.shape
        L_pad = max(8, _round_up(L, 8))
        B = off_mat.shape[1]
        B_pad = max(8, _round_up(B, 8))

        src_l, miss_l, wb_l, lookup_l = [], [], [], []
        for t in range(T):
            cs = self.cache_sizes[t]
            cbase = int(self.cache_base[t])
            bbase = int(self.back_base[t])
            idxs = idx_mat[t]                                    # (L,)
            occ = occ_tables[t]                                  # (cs, ways)

            set_idxs = jnp.remainder(idxs, cs)
            occ_rows = occ[set_idxs]                             # (L, ways)
            eq = occ_rows == idxs[:, None]
            hit = jnp.any(eq, axis=1)
            way = jnp.argmax(eq, axis=1).astype(jnp.int32)
            hit_local = cs * way + set_idxs
            miss = jnp.logical_not(hit)
            miss_rank = jnp.cumsum(miss.astype(jnp.int32)) - 1
            aux_local = cs * self.num_ways + miss_rank

            # local cache lookup index (what the reference module returns)
            lookup_l.append(jnp.where(hit, hit_local, aux_local).astype(jnp.int32))

            # gather source (global row): cache row for hits, backing row for misses
            src = jnp.where(hit, cbase + hit_local, bbase + idxs).astype(jnp.int32)
            # aux write-back destination (global cache row), -1 => skip.
            # (Misses beyond aux_table_size still contribute the correct backing
            #  row to the bag sum but are not cached.)
            can_wb = jnp.logical_and(miss, miss_rank < self.aux_table_size)
            wb = jnp.where(can_wb, cbase + aux_local, -1).astype(jnp.int32)
            missf = miss.astype(jnp.int32)

            pad = L_pad - L
            if pad:
                src = jnp.concatenate([src, jnp.full((pad,), cbase, jnp.int32)])
                missf = jnp.concatenate([missf, jnp.zeros((pad,), jnp.int32)])
                wb = jnp.concatenate([wb, jnp.full((pad,), -1, jnp.int32)])
            src_l.append(src)
            miss_l.append(missf)
            wb_l.append(wb)

        src_rows = jnp.stack(src_l)                              # (T, L_pad)
        miss_flags = jnp.stack(miss_l)
        wb_rows = jnp.stack(wb_l)
        lookup_local = jnp.stack(lookup_l)                       # (T, L)

        cache_new, pooled = fused_cache_embedding_bag(
            src_rows, miss_flags, wb_rows, off_mat.astype(jnp.int32),
            cache_cat, backing_cat, L=L, B=B, B_pad=B_pad)
        return cache_new, pooled, lookup_local

    def forward(self, lS_o, lS_i, backing_cat):
        T = len(self.cache_sizes)
        assert len(lS_o) == T and len(lS_i) == T, "corrupted model input"
        idx_mat = jnp.stack([jnp.asarray(x, dtype=jnp.int32) for x in lS_i])  # (T, L)
        off_mat = jnp.stack([jnp.asarray(x, dtype=jnp.int32) for x in lS_o])  # (T, B)

        cache_new, pooled, lookup_local = self._fwd(
            self.emb_cat, backing_cat, tuple(self.occupancy_tables),
            idx_mat, off_mat)
        self.emb_cat = cache_new        # aliased/donated: no HBM table copy

        B = off_mat.shape[1]
        ly = [pooled[k, :B, :] for k in range(T)]
        cache_group_idxs = [lookup_local[k] for k in range(T)]
        # TODO(synk): reference keeps only the dynamically-shaped missed entries;
        # we keep full-length (lookup_idx, sparse_idx) pairs instead.
        self.victim_cache_entries = [(lookup_local[k], idx_mat[k]) for k in range(T)]
        return ly, cache_group_idxs


# ---------------------------------- driver ------------------------------------

if __name__ == "__main__":
    key = jax.random.PRNGKey(0)
    k_mod, k_back, k_idx0, k_idx1 = jax.random.split(key, 4)

    m_spa = 128              # lane-dense embedding dim (multiple of 128)
    ln_emb = np.array([50, 60])
    max_cache_size = 16      # find_next_prime -> 16 (faithful to reference isPrime)
    aux_table_size = 12
    num_ways = 2
    L, B = 8, 4              # lookups / bags per table

    module = EmbeddingTableCacheGroup(m_spa, ln_emb, max_cache_size,
                                      aux_table_size, num_ways, k_mod)

    # Backing (full) embedding tables, concatenated once: (sum(ln_emb), m).
    backing_cat = jax.random.normal(k_back, (int(ln_emb.sum()), m_spa), jnp.float32)

    # Sparse inputs.
    lS_i = [
        jax.random.randint(k_idx0, (L,), 0, int(ln_emb[0]), dtype=jnp.int32),
        jax.random.randint(k_idx1, (L,), 0, int(ln_emb[1]), dtype=jnp.int32),
    ]
    lS_o = [jnp.array([0, 2, 4, 6], dtype=jnp.int32)] * 2

    # Warm the cache with some of the lookup indices so both hit and miss
    # paths are exercised (occupancy tables start at -1, as in __init__).
    module.warm(0, np.asarray(lS_i[0])[:4])
    module.warm(1, np.asarray(lS_i[1])[:4])

    ly, cache_group_idxs = module.forward(lS_o, lS_i, backing_cat)
    ly = [jax.block_until_ready(v) for v in ly]
    jax.block_until_ready(module.emb_cat)

    # --- check against a numpy EmbeddingBag(sum) reference on the UPDATED cache
    ok = True
    back_np = np.asarray(backing_cat)
    for k in range(len(ly)):
        w = np.asarray(module.get_table_weight(k))
        idxs = np.asarray(cache_group_idxs[k])
        offs = np.asarray(lS_o[k])
        bag_ids = (np.arange(L)[:, None] >= offs[None, :]).sum(1) - 1
        ref = np.zeros((B, m_spa), np.float32)
        for i in range(L):
            ref[int(bag_ids[i])] += w[int(idxs[i])]
        ok &= np.allclose(np.asarray(ly[k]), ref, atol=1e-4, rtol=1e-4)

        # check that the in-kernel aux write-back landed (miss rows == backing rows)
        occ = np.asarray(module.occupancy_tables[k])
        cs = module.cache_sizes[k]
        idxs_k = np.asarray(lS_i[k])
        hit = (occ[idxs_k % cs] == idxs_k[:, None]).any(axis=1)
        bloc = int(module.back_base[k])
        for i in range(L):
            if not hit[i]:
                ok &= bool(np.array_equal(w[int(idxs[i])], back_np[bloc + int(idxs_k[i])]))

    print("KERNEL_OK" if ok else "MISMATCH")
</pallas_src>

<mosaic_0001>
module attributes {stable_mosaic.version = 11 : i64} {
  func.func @kernel(%arg0: i32, %arg1: memref<2x8xi32, #tpu.memory_space<smem>>, %arg2: memref<2x8xi32, #tpu.memory_space<smem>>, %arg3: memref<2x8xi32, #tpu.memory_space<smem>>, %arg4: memref<2x4xi32, #tpu.memory_space<smem>>, %arg5: memref<88x128xf32, #tpu.memory_space<any>>, %arg6: memref<110x128xf32, #tpu.memory_space<any>>, %arg7: memref<88x128xf32, #tpu.memory_space<any>>, %arg8: memref<1x8x128xf32, #tpu.memory_space<vmem>>, %arg9: memref<8x128xf32, #tpu.memory_space<vmem>>, %arg10: memref<8x!tpu.dma_semaphore, #tpu.memory_space<semaphore_mem>>, %arg11: memref<8x!tpu.dma_semaphore, #tpu.memory_space<semaphore_mem>>) attributes {dimension_semantics = [#tpu.dimension_semantics<parallel>], iteration_bounds = array<i64: 2>, scalar_prefetch = 4 : i64, scratch_operands = 3 : i64, tpu.core_type = #tpu.core_type<tc>, window_params = [{}, {}, {}, {transform_indices = @transform_3, window_bounds = array<i64: 1, 8, 128>}]} {
    %0 = arith.index_cast %arg0 : i32 to index
    %c0 = arith.constant 0 : index
    %1 = memref.load %arg1[%0, %c0] : memref<2x8xi32, #tpu.memory_space<smem>>
    %2 = arith.index_cast %arg0 : i32 to index
    %c0_0 = arith.constant 0 : index
    %3 = memref.load %arg2[%2, %c0_0] : memref<2x8xi32, #tpu.memory_space<smem>>
    %c1_i32 = arith.constant 1 : i32
    %4 = arith.cmpi eq, %3, %c1_i32 : i32
    %5 = arith.extui %4 : i1 to i32
    %c0_i32 = arith.constant 0 : i32
    %6 = arith.cmpi ne, %5, %c0_i32 : i32
    scf.if %6 {
      %c0_i32_137 = arith.constant 0 : i32
      %c0_i32_138 = arith.constant 0 : i32
      %248 = tpu.memref_slice %arg6[%1, %c0_i32_138] : memref<110x128xf32, #tpu.memory_space<any>> -> memref<1x128xf32, #tpu.memory_space<any>>
      %c0_i32_139 = arith.constant 0 : i32
      %c0_i32_140 = arith.constant 0 : i32
      %249 = tpu.memref_slice %arg9[%c0_i32_139, %c0_i32_140] : memref<8x128xf32, #tpu.memory_space<vmem>> -> memref<1x128xf32, #tpu.memory_space<vmem>>
      %250 = tpu.memref_slice %arg10[%c0_i32_137] : memref<8x!tpu.dma_semaphore, #tpu.memory_space<semaphore_mem>> -> memref<1x!tpu.dma_semaphore, #tpu.memory_space<semaphore_mem>>
      %251 = tpu.memref_squeeze %250 : memref<1x!tpu.dma_semaphore, #tpu.memory_space<semaphore_mem>> -> memref<!tpu.dma_semaphore, #tpu.memory_space<semaphore_mem>>
      tpu.enqueue_dma source(%248 : memref<1x128xf32, #tpu.memory_space<any>>) target(%249 : memref<1x128xf32, #tpu.memory_space<vmem>>) target_semaphore(%251 : memref<!tpu.dma_semaphore, #tpu.memory_space<semaphore_mem>>)
    } else {
    }
    %7 = arith.index_cast %arg0 : i32 to index
    %c0_1 = arith.constant 0 : index
    %8 = memref.load %arg2[%7, %c0_1] : memref<2x8xi32, #tpu.memory_space<smem>>
    %c0_i32_2 = arith.constant 0 : i32
    %9 = arith.cmpi eq, %8, %c0_i32_2 : i32
    %10 = arith.extui %9 : i1 to i32
    %c0_i32_3 = arith.constant 0 : i32
    %11 = arith.cmpi ne, %10, %c0_i32_3 : i32
    scf.if %11 {
      %c0_i32_137 = arith.constant 0 : i32
      %c0_i32_138 = arith.constant 0 : i32
      %248 = tpu.memref_slice %arg5[%1, %c0_i32_138] : memref<88x128xf32, #tpu.memory_space<any>> -> memref<1x128xf32, #tpu.memory_space<any>>
      %c0_i32_139 = arith.constant 0 : i32
      %c0_i32_140 = arith.constant 0 : i32
      %249 = tpu.memref_slice %arg9[%c0_i32_139, %c0_i32_140] : memref<8x128xf32, #tpu.memory_space<vmem>> -> memref<1x128xf32, #tpu.memory_space<vmem>>
      %250 = tpu.memref_slice %arg10[%c0_i32_137] : memref<8x!tpu.dma_semaphore, #tpu.memory_space<semaphore_mem>> -> memref<1x!tpu.dma_semaphore, #tpu.memory_space<semaphore_mem>>
      %251 = tpu.memref_squeeze %250 : memref<1x!tpu.dma_semaphore, #tpu.memory_space<semaphore_mem>> -> memref<!tpu.dma_semaphore, #tpu.memory_space<semaphore_mem>>
      tpu.enqueue_dma source(%248 : memref<1x128xf32, #tpu.memory_space<any>>) target(%249 : memref<1x128xf32, #tpu.memory_space<vmem>>) target_semaphore(%251 : memref<!tpu.dma_semaphore, #tpu.memory_space<semaphore_mem>>)
    } else {
    }
    %12 = arith.index_cast %arg0 : i32 to index
    %c1 = arith.constant 1 : index
    %13 = memref.load %arg1[%12, %c1] : memref<2x8xi32, #tpu.memory_space<smem>>
    %14 = arith.index_cast %arg0 : i32 to index
    %c1_4 = arith.constant 1 : index
    %15 = memref.load %arg2[%14, %c1_4] : memref<2x8xi32, #tpu.memory_space<smem>>
    %c1_i32_5 = arith.constant 1 : i32
    %16 = arith.cmpi eq, %15, %c1_i32_5 : i32
    %17 = arith.extui %16 : i1 to i32
    %c0_i32_6 = arith.constant 0 : i32
    %18 = arith.cmpi ne, %17, %c0_i32_6 : i32
    scf.if %18 {
      %c1_i32_137 = arith.constant 1 : i32
      %c0_i32_138 = arith.constant 0 : i32
      %248 = tpu.memref_slice %arg6[%13, %c0_i32_138] : memref<110x128xf32, #tpu.memory_space<any>> -> memref<1x128xf32, #tpu.memory_space<any>>
      %c1_i32_139 = arith.constant 1 : i32
      %c0_i32_140 = arith.constant 0 : i32
      %249 = tpu.memref_slice %arg9[%c1_i32_139, %c0_i32_140] : memref<8x128xf32, #tpu.memory_space<vmem>> -> memref<1x128xf32, #tpu.memory_space<vmem>>
      %250 = tpu.memref_slice %arg10[%c1_i32_137] : memref<8x!tpu.dma_semaphore, #tpu.memory_space<semaphore_mem>> -> memref<1x!tpu.dma_semaphore, #tpu.memory_space<semaphore_mem>>
      %251 = tpu.memref_squeeze %250 : memref<1x!tpu.dma_semaphore, #tpu.memory_space<semaphore_mem>> -> memref<!tpu.dma_semaphore, #tpu.memory_space<semaphore_mem>>
      tpu.enqueue_dma source(%248 : memref<1x128xf32, #tpu.memory_space<any>>) target(%249 : memref<1x128xf32, #tpu.memory_space<vmem>>) target_semaphore(%251 : memref<!tpu.dma_semaphore, #tpu.memory_space<semaphore_mem>>)
    } else {
    }
    %19 = arith.index_cast %arg0 : i32 to index
    %c1_7 = arith.constant 1 : index
    %20 = memref.load %arg2[%19, %c1_7] : memref<2x8xi32, #tpu.memory_space<smem>>
    %c0_i32_8 = arith.constant 0 : i32
    %21 = arith.cmpi eq, %20, %c0_i32_8 : i32
    %22 = arith.extui %21 : i1 to i32
    %c0_i32_9 = arith.constant 0 : i32
    %23 = arith.cmpi ne, %22, %c0_i32_9 : i32
    scf.if %23 {
      %c1_i32_137 = arith.constant 1 : i32
      %c0_i32_138 = arith.constant 0 : i32
      %248 = tpu.memref_slice %arg5[%13, %c0_i32_138] : memref<88x128xf32, #tpu.memory_space<any>> -> memref<1x128xf32, #tpu.memory_space<any>>
      %c1_i32_139 = arith.constant 1 : i32
      %c0_i32_140 = arith.constant 0 : i32
      %249 = tpu.memref_slice %arg9[%c1_i32_139, %c0_i32_140] : memref<8x128xf32, #tpu.memory_space<vmem>> -> memref<1x128xf32, #tpu.memory_space<vmem>>
      %250 = tpu.memref_slice %arg10[%c1_i32_137] : memref<8x!tpu.dma_semaphore, #tpu.memory_space<semaphore_mem>> -> memref<1x!tpu.dma_semaphore, #tpu.memory_space<semaphore_mem>>
      %251 = tpu.memref_squeeze %250 : memref<1x!tpu.dma_semaphore, #tpu.memory_space<semaphore_mem>> -> memref<!tpu.dma_semaphore, #tpu.memory_space<semaphore_mem>>
      tpu.enqueue_dma source(%248 : memref<1x128xf32, #tpu.memory_space<any>>) target(%249 : memref<1x128xf32, #tpu.memory_space<vmem>>) target_semaphore(%251 : memref<!tpu.dma_semaphore, #tpu.memory_space<semaphore_mem>>)
    } else {
    }
    %24 = arith.index_cast %arg0 : i32 to index
    %c2 = arith.constant 2 : index
    %25 = memref.load %arg1[%24, %c2] : memref<2x8xi32, #tpu.memory_space<smem>>
    %26 = arith.index_cast %arg0 : i32 to index
    %c2_10 = arith.constant 2 : index
    %27 = memref.load %arg2[%26, %c2_10] : memref<2x8xi32, #tpu.memory_space<smem>>
    %c1_i32_11 = arith.constant 1 : i32
    %28 = arith.cmpi eq, %27, %c1_i32_11 : i32
    %29 = arith.extui %28 : i1 to i32
    %c0_i32_12 = arith.constant 0 : i32
    %30 = arith.cmpi ne, %29, %c0_i32_12 : i32
    scf.if %30 {
      %c2_i32_137 = arith.constant 2 : i32
      %c0_i32_138 = arith.constant 0 : i32
      %248 = tpu.memref_slice %arg6[%25, %c0_i32_138] : memref<110x128xf32, #tpu.memory_space<any>> -> memref<1x128xf32, #tpu.memory_space<any>>
      %c2_i32_139 = arith.constant 2 : i32
      %c0_i32_140 = arith.constant 0 : i32
      %249 = tpu.memref_slice %arg9[%c2_i32_139, %c0_i32_140] : memref<8x128xf32, #tpu.memory_space<vmem>> -> memref<1x128xf32, #tpu.memory_space<vmem>>
      %250 = tpu.memref_slice %arg10[%c2_i32_137] : memref<8x!tpu.dma_semaphore, #tpu.memory_space<semaphore_mem>> -> memref<1x!tpu.dma_semaphore, #tpu.memory_space<semaphore_mem>>
      %251 = tpu.memref_squeeze %250 : memref<1x!tpu.dma_semaphore, #tpu.memory_space<semaphore_mem>> -> memref<!tpu.dma_semaphore, #tpu.memory_space<semaphore_mem>>
      tpu.enqueue_dma source(%248 : memref<1x128xf32, #tpu.memory_space<any>>) target(%249 : memref<1x128xf32, #tpu.memory_space<vmem>>) target_semaphore(%251 : memref<!tpu.dma_semaphore, #tpu.memory_space<semaphore_mem>>)
    } else {
    }
    %31 = arith.index_cast %arg0 : i32 to index
    %c2_13 = arith.constant 2 : index
    %32 = memref.load %arg2[%31, %c2_13] : memref<2x8xi32, #tpu.memory_space<smem>>
    %c0_i32_14 = arith.constant 0 : i32
    %33 = arith.cmpi eq, %32, %c0_i32_14 : i32
    %34 = arith.extui %33 : i1 to i32
    %c0_i32_15 = arith.constant 0 : i32
    %35 = arith.cmpi ne, %34, %c0_i32_15 : i32
    scf.if %35 {
      %c2_i32_137 = arith.constant 2 : i32
      %c0_i32_138 = arith.constant 0 : i32
      %248 = tpu.memref_slice %arg5[%25, %c0_i32_138] : memref<88x128xf32, #tpu.memory_space<any>> -> memref<1x128xf32, #tpu.memory_space<any>>
      %c2_i32_139 = arith.constant 2 : i32
      %c0_i32_140 = arith.constant 0 : i32
      %249 = tpu.memref_slice %arg9[%c2_i32_139, %c0_i32_140] : memref<8x128xf32, #tpu.memory_space<vmem>> -> memref<1x128xf32, #tpu.memory_space<vmem>>
      %250 = tpu.memref_slice %arg10[%c2_i32_137] : memref<8x!tpu.dma_semaphore, #tpu.memory_space<semaphore_mem>> -> memref<1x!tpu.dma_semaphore, #tpu.memory_space<semaphore_mem>>
      %251 = tpu.memref_squeeze %250 : memref<1x!tpu.dma_semaphore, #tpu.memory_space<semaphore_mem>> -> memref<!tpu.dma_semaphore, #tpu.memory_space<semaphore_mem>>
      tpu.enqueue_dma source(%248 : memref<1x128xf32, #tpu.memory_space<any>>) target(%249 : memref<1x128xf32, #tpu.memory_space<vmem>>) target_semaphore(%251 : memref<!tpu.dma_semaphore, #tpu.memory_space<semaphore_mem>>)
    } else {
    }
    %36 = arith.index_cast %arg0 : i32 to index
    %c3 = arith.constant 3 : index
    %37 = memref.load %arg1[%36, %c3] : memref<2x8xi32, #tpu.memory_space<smem>>
    %38 = arith.index_cast %arg0 : i32 to index
    %c3_16 = arith.constant 3 : index
    %39 = memref.load %arg2[%38, %c3_16] : memref<2x8xi32, #tpu.memory_space<smem>>
    %c1_i32_17 = arith.constant 1 : i32
    %40 = arith.cmpi eq, %39, %c1_i32_17 : i32
    %41 = arith.extui %40 : i1 to i32
    %c0_i32_18 = arith.constant 0 : i32
    %42 = arith.cmpi ne, %41, %c0_i32_18 : i32
    scf.if %42 {
      %c3_i32_137 = arith.constant 3 : i32
      %c0_i32_138 = arith.constant 0 : i32
      %248 = tpu.memref_slice %arg6[%37, %c0_i32_138] : memref<110x128xf32, #tpu.memory_space<any>> -> memref<1x128xf32, #tpu.memory_space<any>>
      %c3_i32_139 = arith.constant 3 : i32
      %c0_i32_140 = arith.constant 0 : i32
      %249 = tpu.memref_slice %arg9[%c3_i32_139, %c0_i32_140] : memref<8x128xf32, #tpu.memory_space<vmem>> -> memref<1x128xf32, #tpu.memory_space<vmem>>
      %250 = tpu.memref_slice %arg10[%c3_i32_137] : memref<8x!tpu.dma_semaphore, #tpu.memory_space<semaphore_mem>> -> memref<1x!tpu.dma_semaphore, #tpu.memory_space<semaphore_mem>>
      %251 = tpu.memref_squeeze %250 : memref<1x!tpu.dma_semaphore, #tpu.memory_space<semaphore_mem>> -> memref<!tpu.dma_semaphore, #tpu.memory_space<semaphore_mem>>
      tpu.enqueue_dma source(%248 : memref<1x128xf32, #tpu.memory_space<any>>) target(%249 : memref<1x128xf32, #tpu.memory_space<vmem>>) target_semaphore(%251 : memref<!tpu.dma_semaphore, #tpu.memory_space<semaphore_mem>>)
    } else {
    }
    %43 = arith.index_cast %arg0 : i32 to index
    %c3_19 = arith.constant 3 : index
    %44 = memref.load %arg2[%43, %c3_19] : memref<2x8xi32, #tpu.memory_space<smem>>
    %c0_i32_20 = arith.constant 0 : i32
    %45 = arith.cmpi eq, %44, %c0_i32_20 : i32
    %46 = arith.extui %45 : i1 to i32
    %c0_i32_21 = arith.constant 0 : i32
    %47 = arith.cmpi ne, %46, %c0_i32_21 : i32
    scf.if %47 {
      %c3_i32_137 = arith.constant 3 : i32
      %c0_i32_138 = arith.constant 0 : i32
      %248 = tpu.memref_slice %arg5[%37, %c0_i32_138] : memref<88x128xf32, #tpu.memory_space<any>> -> memref<1x128xf32, #tpu.memory_space<any>>
      %c3_i32_139 = arith.constant 3 : i32
      %c0_i32_140 = arith.constant 0 : i32
      %249 = tpu.memref_slice %arg9[%c3_i32_139, %c0_i32_140] : memref<8x128xf32, #tpu.memory_space<vmem>> -> memref<1x128xf32, #tpu.memory_space<vmem>>
      %250 = tpu.memref_slice %arg10[%c3_i32_137] : memref<8x!tpu.dma_semaphore, #tpu.memory_space<semaphore_mem>> -> memref<1x!tpu.dma_semaphore, #tpu.memory_space<semaphore_mem>>
      %251 = tpu.memref_squeeze %250 : memref<1x!tpu.dma_semaphore, #tpu.memory_space<semaphore_mem>> -> memref<!tpu.dma_semaphore, #tpu.memory_space<semaphore_mem>>
      tpu.enqueue_dma source(%248 : memref<1x128xf32, #tpu.memory_space<any>>) target(%249 : memref<1x128xf32, #tpu.memory_space<vmem>>) target_semaphore(%251 : memref<!tpu.dma_semaphore, #tpu.memory_space<semaphore_mem>>)
    } else {
    }
    %48 = arith.index_cast %arg0 : i32 to index
    %c4 = arith.constant 4 : index
    %49 = memref.load %arg1[%48, %c4] : memref<2x8xi32, #tpu.memory_space<smem>>
    %50 = arith.index_cast %arg0 : i32 to index
    %c4_22 = arith.constant 4 : index
    %51 = memref.load %arg2[%50, %c4_22] : memref<2x8xi32, #tpu.memory_space<smem>>
    %c1_i32_23 = arith.constant 1 : i32
    %52 = arith.cmpi eq, %51, %c1_i32_23 : i32
    %53 = arith.extui %52 : i1 to i32
    %c0_i32_24 = arith.constant 0 : i32
    %54 = arith.cmpi ne, %53, %c0_i32_24 : i32
    scf.if %54 {
      %c4_i32_137 = arith.constant 4 : i32
      %c0_i32_138 = arith.constant 0 : i32
      %248 = tpu.memref_slice %arg6[%49, %c0_i32_138] : memref<110x128xf32, #tpu.memory_space<any>> -> memref<1x128xf32, #tpu.memory_space<any>>
      %c4_i32_139 = arith.constant 4 : i32
      %c0_i32_140 = arith.constant 0 : i32
      %249 = tpu.memref_slice %arg9[%c4_i32_139, %c0_i32_140] : memref<8x128xf32, #tpu.memory_space<vmem>> -> memref<1x128xf32, #tpu.memory_space<vmem>>
      %250 = tpu.memref_slice %arg10[%c4_i32_137] : memref<8x!tpu.dma_semaphore, #tpu.memory_space<semaphore_mem>> -> memref<1x!tpu.dma_semaphore, #tpu.memory_space<semaphore_mem>>
      %251 = tpu.memref_squeeze %250 : memref<1x!tpu.dma_semaphore, #tpu.memory_space<semaphore_mem>> -> memref<!tpu.dma_semaphore, #tpu.memory_space<semaphore_mem>>
      tpu.enqueue_dma source(%248 : memref<1x128xf32, #tpu.memory_space<any>>) target(%249 : memref<1x128xf32, #tpu.memory_space<vmem>>) target_semaphore(%251 : memref<!tpu.dma_semaphore, #tpu.memory_space<semaphore_mem>>)
    } else {
    }
    %55 = arith.index_cast %arg0 : i32 to index
    %c4_25 = arith.constant 4 : index
    %56 = memref.load %arg2[%55, %c4_25] : memref<2x8xi32, #tpu.memory_space<smem>>
    %c0_i32_26 = arith.constant 0 : i32
    %57 = arith.cmpi eq, %56, %c0_i32_26 : i32
    %58 = arith.extui %57 : i1 to i32
    %c0_i32_27 = arith.constant 0 : i32
    %59 = arith.cmpi ne, %58, %c0_i32_27 : i32
    scf.if %59 {
      %c4_i32_137 = arith.constant 4 : i32
      %c0_i32_138 = arith.constant 0 : i32
      %248 = tpu.memref_slice %arg5[%49, %c0_i32_138] : memref<88x128xf32, #tpu.memory_space<any>> -> memref<1x128xf32, #tpu.memory_space<any>>
      %c4_i32_139 = arith.constant 4 : i32
      %c0_i32_140 = arith.constant 0 : i32
      %249 = tpu.memref_slice %arg9[%c4_i32_139, %c0_i32_140] : memref<8x128xf32, #tpu.memory_space<vmem>> -> memref<1x128xf32, #tpu.memory_space<vmem>>
      %250 = tpu.memref_slice %arg10[%c4_i32_137] : memref<8x!tpu.dma_semaphore, #tpu.memory_space<semaphore_mem>> -> memref<1x!tpu.dma_semaphore, #tpu.memory_space<semaphore_mem>>
      %251 = tpu.memref_squeeze %250 : memref<1x!tpu.dma_semaphore, #tpu.memory_space<semaphore_mem>> -> memref<!tpu.dma_semaphore, #tpu.memory_space<semaphore_mem>>
      tpu.enqueue_dma source(%248 : memref<1x128xf32, #tpu.memory_space<any>>) target(%249 : memref<1x128xf32, #tpu.memory_space<vmem>>) target_semaphore(%251 : memref<!tpu.dma_semaphore, #tpu.memory_space<semaphore_mem>>)
    } else {
    }
    %60 = arith.index_cast %arg0 : i32 to index
    %c5 = arith.constant 5 : index
    %61 = memref.load %arg1[%60, %c5] : memref<2x8xi32, #tpu.memory_space<smem>>
    %62 = arith.index_cast %arg0 : i32 to index
    %c5_28 = arith.constant 5 : index
    %63 = memref.load %arg2[%62, %c5_28] : memref<2x8xi32, #tpu.memory_space<smem>>
    %c1_i32_29 = arith.constant 1 : i32
    %64 = arith.cmpi eq, %63, %c1_i32_29 : i32
    %65 = arith.extui %64 : i1 to i32
    %c0_i32_30 = arith.constant 0 : i32
    %66 = arith.cmpi ne, %65, %c0_i32_30 : i32
    scf.if %66 {
      %c5_i32_137 = arith.constant 5 : i32
      %c0_i32_138 = arith.constant 0 : i32
      %248 = tpu.memref_slice %arg6[%61, %c0_i32_138] : memref<110x128xf32, #tpu.memory_space<any>> -> memref<1x128xf32, #tpu.memory_space<any>>
      %c5_i32_139 = arith.constant 5 : i32
      %c0_i32_140 = arith.constant 0 : i32
      %249 = tpu.memref_slice %arg9[%c5_i32_139, %c0_i32_140] : memref<8x128xf32, #tpu.memory_space<vmem>> -> memref<1x128xf32, #tpu.memory_space<vmem>>
      %250 = tpu.memref_slice %arg10[%c5_i32_137] : memref<8x!tpu.dma_semaphore, #tpu.memory_space<semaphore_mem>> -> memref<1x!tpu.dma_semaphore, #tpu.memory_space<semaphore_mem>>
      %251 = tpu.memref_squeeze %250 : memref<1x!tpu.dma_semaphore, #tpu.memory_space<semaphore_mem>> -> memref<!tpu.dma_semaphore, #tpu.memory_space<semaphore_mem>>
      tpu.enqueue_dma source(%248 : memref<1x128xf32, #tpu.memory_space<any>>) target(%249 : memref<1x128xf32, #tpu.memory_space<vmem>>) target_semaphore(%251 : memref<!tpu.dma_semaphore, #tpu.memory_space<semaphore_mem>>)
    } else {
    }
    %67 = arith.index_cast %arg0 : i32 to index
    %c5_31 = arith.constant 5 : index
    %68 = memref.load %arg2[%67, %c5_31] : memref<2x8xi32, #tpu.memory_space<smem>>
    %c0_i32_32 = arith.constant 0 : i32
    %69 = arith.cmpi eq, %68, %c0_i32_32 : i32
    %70 = arith.extui %69 : i1 to i32
    %c0_i32_33 = arith.constant 0 : i32
    %71 = arith.cmpi ne, %70, %c0_i32_33 : i32
    scf.if %71 {
      %c5_i32_137 = arith.constant 5 : i32
      %c0_i32_138 = arith.constant 0 : i32
      %248 = tpu.memref_slice %arg5[%61, %c0_i32_138] : memref<88x128xf32, #tpu.memory_space<any>> -> memref<1x128xf32, #tpu.memory_space<any>>
      %c5_i32_139 = arith.constant 5 : i32
      %c0_i32_140 = arith.constant 0 : i32
      %249 = tpu.memref_slice %arg9[%c5_i32_139, %c0_i32_140] : memref<8x128xf32, #tpu.memory_space<vmem>> -> memref<1x128xf32, #tpu.memory_space<vmem>>
      %250 = tpu.memref_slice %arg10[%c5_i32_137] : memref<8x!tpu.dma_semaphore, #tpu.memory_space<semaphore_mem>> -> memref<1x!tpu.dma_semaphore, #tpu.memory_space<semaphore_mem>>
      %251 = tpu.memref_squeeze %250 : memref<1x!tpu.dma_semaphore, #tpu.memory_space<semaphore_mem>> -> memref<!tpu.dma_semaphore, #tpu.memory_space<semaphore_mem>>
      tpu.enqueue_dma source(%248 : memref<1x128xf32, #tpu.memory_space<any>>) target(%249 : memref<1x128xf32, #tpu.memory_space<vmem>>) target_semaphore(%251 : memref<!tpu.dma_semaphore, #tpu.memory_space<semaphore_mem>>)
    } else {
    }
    %72 = arith.index_cast %arg0 : i32 to index
    %c6 = arith.constant 6 : index
    %73 = memref.load %arg1[%72, %c6] : memref<2x8xi32, #tpu.memory_space<smem>>
    %74 = arith.index_cast %arg0 : i32 to index
    %c6_34 = arith.constant 6 : index
    %75 = memref.load %arg2[%74, %c6_34] : memref<2x8xi32, #tpu.memory_space<smem>>
    %c1_i32_35 = arith.constant 1 : i32
    %76 = arith.cmpi eq, %75, %c1_i32_35 : i32
    %77 = arith.extui %76 : i1 to i32
    %c0_i32_36 = arith.constant 0 : i32
    %78 = arith.cmpi ne, %77, %c0_i32_36 : i32
    scf.if %78 {
      %c6_i32_137 = arith.constant 6 : i32
      %c0_i32_138 = arith.constant 0 : i32
      %248 = tpu.memref_slice %arg6[%73, %c0_i32_138] : memref<110x128xf32, #tpu.memory_space<any>> -> memref<1x128xf32, #tpu.memory_space<any>>
      %c6_i32_139 = arith.constant 6 : i32
      %c0_i32_140 = arith.constant 0 : i32
      %249 = tpu.memref_slice %arg9[%c6_i32_139, %c0_i32_140] : memref<8x128xf32, #tpu.memory_space<vmem>> -> memref<1x128xf32, #tpu.memory_space<vmem>>
      %250 = tpu.memref_slice %arg10[%c6_i32_137] : memref<8x!tpu.dma_semaphore, #tpu.memory_space<semaphore_mem>> -> memref<1x!tpu.dma_semaphore, #tpu.memory_space<semaphore_mem>>
      %251 = tpu.memref_squeeze %250 : memref<1x!tpu.dma_semaphore, #tpu.memory_space<semaphore_mem>> -> memref<!tpu.dma_semaphore, #tpu.memory_space<semaphore_mem>>
      tpu.enqueue_dma source(%248 : memref<1x128xf32, #tpu.memory_space<any>>) target(%249 : memref<1x128xf32, #tpu.memory_space<vmem>>) target_semaphore(%251 : memref<!tpu.dma_semaphore, #tpu.memory_space<semaphore_mem>>)
    } else {
    }
    %79 = arith.index_cast %arg0 : i32 to index
    %c6_37 = arith.constant 6 : index
    %80 = memref.load %arg2[%79, %c6_37] : memref<2x8xi32, #tpu.memory_space<smem>>
    %c0_i32_38 = arith.constant 0 : i32
    %81 = arith.cmpi eq, %80, %c0_i32_38 : i32
    %82 = arith.extui %81 : i1 to i32
    %c0_i32_39 = arith.constant 0 : i32
    %83 = arith.cmpi ne, %82, %c0_i32_39 : i32
    scf.if %83 {
      %c6_i32_137 = arith.constant 6 : i32
      %c0_i32_138 = arith.constant 0 : i32
      %248 = tpu.memref_slice %arg5[%73, %c0_i32_138] : memref<88x128xf32, #tpu.memory_space<any>> -> memref<1x128xf32, #tpu.memory_space<any>>
      %c6_i32_139 = arith.constant 6 : i32
      %c0_i32_140 = arith.constant 0 : i32
      %249 = tpu.memref_slice %arg9[%c6_i32_139, %c0_i32_140] : memref<8x128xf32, #tpu.memory_space<vmem>> -> memref<1x128xf32, #tpu.memory_space<vmem>>
      %250 = tpu.memref_slice %arg10[%c6_i32_137] : memref<8x!tpu.dma_semaphore, #tpu.memory_space<semaphore_mem>> -> memref<1x!tpu.dma_semaphore, #tpu.memory_space<semaphore_mem>>
      %251 = tpu.memref_squeeze %250 : memref<1x!tpu.dma_semaphore, #tpu.memory_space<semaphore_mem>> -> memref<!tpu.dma_semaphore, #tpu.memory_space<semaphore_mem>>
      tpu.enqueue_dma source(%248 : memref<1x128xf32, #tpu.memory_space<any>>) target(%249 : memref<1x128xf32, #tpu.memory_space<vmem>>) target_semaphore(%251 : memref<!tpu.dma_semaphore, #tpu.memory_space<semaphore_mem>>)
    } else {
    }
    %84 = arith.index_cast %arg0 : i32 to index
    %c7 = arith.constant 7 : index
    %85 = memref.load %arg1[%84, %c7] : memref<2x8xi32, #tpu.memory_space<smem>>
    %86 = arith.index_cast %arg0 : i32 to index
    %c7_40 = arith.constant 7 : index
    %87 = memref.load %arg2[%86, %c7_40] : memref<2x8xi32, #tpu.memory_space<smem>>
    %c1_i32_41 = arith.constant 1 : i32
    %88 = arith.cmpi eq, %87, %c1_i32_41 : i32
    %89 = arith.extui %88 : i1 to i32
    %c0_i32_42 = arith.constant 0 : i32
    %90 = arith.cmpi ne, %89, %c0_i32_42 : i32
    scf.if %90 {
      %c7_i32_137 = arith.constant 7 : i32
      %c0_i32_138 = arith.constant 0 : i32
      %248 = tpu.memref_slice %arg6[%85, %c0_i32_138] : memref<110x128xf32, #tpu.memory_space<any>> -> memref<1x128xf32, #tpu.memory_space<any>>
      %c7_i32_139 = arith.constant 7 : i32
      %c0_i32_140 = arith.constant 0 : i32
      %249 = tpu.memref_slice %arg9[%c7_i32_139, %c0_i32_140] : memref<8x128xf32, #tpu.memory_space<vmem>> -> memref<1x128xf32, #tpu.memory_space<vmem>>
      %250 = tpu.memref_slice %arg10[%c7_i32_137] : memref<8x!tpu.dma_semaphore, #tpu.memory_space<semaphore_mem>> -> memref<1x!tpu.dma_semaphore, #tpu.memory_space<semaphore_mem>>
      %251 = tpu.memref_squeeze %250 : memref<1x!tpu.dma_semaphore, #tpu.memory_space<semaphore_mem>> -> memref<!tpu.dma_semaphore, #tpu.memory_space<semaphore_mem>>
      tpu.enqueue_dma source(%248 : memref<1x128xf32, #tpu.memory_space<any>>) target(%249 : memref<1x128xf32, #tpu.memory_space<vmem>>) target_semaphore(%251 : memref<!tpu.dma_semaphore, #tpu.memory_space<semaphore_mem>>)
    } else {
    }
    %91 = arith.index_cast %arg0 : i32 to index
    %c7_43 = arith.constant 7 : index
    %92 = memref.load %arg2[%91, %c7_43] : memref<2x8xi32, #tpu.memory_space<smem>>
    %c0_i32_44 = arith.constant 0 : i32
    %93 = arith.cmpi eq, %92, %c0_i32_44 : i32
    %94 = arith.extui %93 : i1 to i32
    %c0_i32_45 = arith.constant 0 : i32
    %95 = arith.cmpi ne, %94, %c0_i32_45 : i32
    scf.if %95 {
      %c7_i32_137 = arith.constant 7 : i32
      %c0_i32_138 = arith.constant 0 : i32
      %248 = tpu.memref_slice %arg5[%85, %c0_i32_138] : memref<88x128xf32, #tpu.memory_space<any>> -> memref<1x128xf32, #tpu.memory_space<any>>
      %c7_i32_139 = arith.constant 7 : i32
      %c0_i32_140 = arith.constant 0 : i32
      %249 = tpu.memref_slice %arg9[%c7_i32_139, %c0_i32_140] : memref<8x128xf32, #tpu.memory_space<vmem>> -> memref<1x128xf32, #tpu.memory_space<vmem>>
      %250 = tpu.memref_slice %arg10[%c7_i32_137] : memref<8x!tpu.dma_semaphore, #tpu.memory_space<semaphore_mem>> -> memref<1x!tpu.dma_semaphore, #tpu.memory_space<semaphore_mem>>
      %251 = tpu.memref_squeeze %250 : memref<1x!tpu.dma_semaphore, #tpu.memory_space<semaphore_mem>> -> memref<!tpu.dma_semaphore, #tpu.memory_space<semaphore_mem>>
      tpu.enqueue_dma source(%248 : memref<1x128xf32, #tpu.memory_space<any>>) target(%249 : memref<1x128xf32, #tpu.memory_space<vmem>>) target_semaphore(%251 : memref<!tpu.dma_semaphore, #tpu.memory_space<semaphore_mem>>)
    } else {
    }
    %c0_i32_46 = arith.constant 0 : i32
    %c0_i32_47 = arith.constant 0 : i32
    %c0_i32_48 = arith.constant 0 : i32
    %96 = tpu.memref_slice %arg5[%c0_i32_47, %c0_i32_48] : memref<88x128xf32, #tpu.memory_space<any>> -> memref<1x128xf32, #tpu.memory_space<any>>
    %c0_i32_49 = arith.constant 0 : i32
    %c0_i32_50 = arith.constant 0 : i32
    %97 = tpu.memref_slice %arg9[%c0_i32_49, %c0_i32_50] : memref<8x128xf32, #tpu.memory_space<vmem>> -> memref<1x128xf32, #tpu.memory_space<vmem>>
    %98 = tpu.memref_slice %arg10[%c0_i32_46] : memref<8x!tpu.dma_semaphore, #tpu.memory_space<semaphore_mem>> -> memref<1x!tpu.dma_semaphore, #tpu.memory_space<semaphore_mem>>
    %99 = tpu.memref_squeeze %98 : memref<1x!tpu.dma_semaphore, #tpu.memory_space<semaphore_mem>> -> memref<!tpu.dma_semaphore, #tpu.memory_space<semaphore_mem>>
    tpu.wait_dma2 semaphore(%99 : memref<!tpu.dma_semaphore, #tpu.memory_space<semaphore_mem>>) src(%96 : memref<1x128xf32, #tpu.memory_space<any>>) dst(%97 : memref<1x128xf32, #tpu.memory_space<vmem>>)
    %100 = arith.index_cast %arg0 : i32 to index
    %c0_51 = arith.constant 0 : index
    %101 = memref.load %arg3[%100, %c0_51] : memref<2x8xi32, #tpu.memory_space<smem>>
    %c0_i32_52 = arith.constant 0 : i32
    %102 = arith.cmpi sge, %101, %c0_i32_52 : i32
    %103 = arith.extui %102 : i1 to i32
    %c0_i32_53 = arith.constant 0 : i32
    %104 = arith.cmpi ne, %103, %c0_i32_53 : i32
    scf.if %104 {
      %c0_i32_137 = arith.constant 0 : i32
      %c0_i32_138 = arith.constant 0 : i32
      %c0_i32_139 = arith.constant 0 : i32
      %248 = tpu.memref_slice %arg9[%c0_i32_138, %c0_i32_139] : memref<8x128xf32, #tpu.memory_space<vmem>> -> memref<1x128xf32, #tpu.memory_space<vmem>>
      %c0_i32_140 = arith.constant 0 : i32
      %249 = tpu.memref_slice %arg7[%101, %c0_i32_140] : memref<88x128xf32, #tpu.memory_space<any>> -> memref<1x128xf32, #tpu.memory_space<any>>
      %250 = tpu.memref_slice %arg11[%c0_i32_137] : memref<8x!tpu.dma_semaphore, #tpu.memory_space<semaphore_mem>> -> memref<1x!tpu.dma_semaphore, #tpu.memory_space<semaphore_mem>>
      %251 = tpu.memref_squeeze %250 : memref<1x!tpu.dma_semaphore, #tpu.memory_space<semaphore_mem>> -> memref<!tpu.dma_semaphore, #tpu.memory_space<semaphore_mem>>
      tpu.enqueue_dma source(%248 : memref<1x128xf32, #tpu.memory_space<vmem>>) target(%249 : memref<1x128xf32, #tpu.memory_space<any>>) target_semaphore(%251 : memref<!tpu.dma_semaphore, #tpu.memory_space<semaphore_mem>>)
    } else {
    }
    %c1_i32_54 = arith.constant 1 : i32
    %c0_i32_55 = arith.constant 0 : i32
    %c0_i32_56 = arith.constant 0 : i32
    %105 = tpu.memref_slice %arg5[%c0_i32_55, %c0_i32_56] : memref<88x128xf32, #tpu.memory_space<any>> -> memref<1x128xf32, #tpu.memory_space<any>>
    %c1_i32_57 = arith.constant 1 : i32
    %c0_i32_58 = arith.constant 0 : i32
    %106 = tpu.memref_slice %arg9[%c1_i32_57, %c0_i32_58] : memref<8x128xf32, #tpu.memory_space<vmem>> -> memref<1x128xf32, #tpu.memory_space<vmem>>
    %107 = tpu.memref_slice %arg10[%c1_i32_54] : memref<8x!tpu.dma_semaphore, #tpu.memory_space<semaphore_mem>> -> memref<1x!tpu.dma_semaphore, #tpu.memory_space<semaphore_mem>>
    %108 = tpu.memref_squeeze %107 : memref<1x!tpu.dma_semaphore, #tpu.memory_space<semaphore_mem>> -> memref<!tpu.dma_semaphore, #tpu.memory_space<semaphore_mem>>
    tpu.wait_dma2 semaphore(%108 : memref<!tpu.dma_semaphore, #tpu.memory_space<semaphore_mem>>) src(%105 : memref<1x128xf32, #tpu.memory_space<any>>) dst(%106 : memref<1x128xf32, #tpu.memory_space<vmem>>)
    %109 = arith.index_cast %arg0 : i32 to index
    %c1_59 = arith.constant 1 : index
    %110 = memref.load %arg3[%109, %c1_59] : memref<2x8xi32, #tpu.memory_space<smem>>
    %c0_i32_60 = arith.constant 0 : i32
    %111 = arith.cmpi sge, %110, %c0_i32_60 : i32
    %112 = arith.extui %111 : i1 to i32
    %c0_i32_61 = arith.constant 0 : i32
    %113 = arith.cmpi ne, %112, %c0_i32_61 : i32
    scf.if %113 {
      %c1_i32_137 = arith.constant 1 : i32
      %c1_i32_138 = arith.constant 1 : i32
      %c0_i32_139 = arith.constant 0 : i32
      %248 = tpu.memref_slice %arg9[%c1_i32_138, %c0_i32_139] : memref<8x128xf32, #tpu.memory_space<vmem>> -> memref<1x128xf32, #tpu.memory_space<vmem>>
      %c0_i32_140 = arith.constant 0 : i32
      %249 = tpu.memref_slice %arg7[%110, %c0_i32_140] : memref<88x128xf32, #tpu.memory_space<any>> -> memref<1x128xf32, #tpu.memory_space<any>>
      %250 = tpu.memref_slice %arg11[%c1_i32_137] : memref<8x!tpu.dma_semaphore, #tpu.memory_space<semaphore_mem>> -> memref<1x!tpu.dma_semaphore, #tpu.memory_space<semaphore_mem>>
      %251 = tpu.memref_squeeze %250 : memref<1x!tpu.dma_semaphore, #tpu.memory_space<semaphore_mem>> -> memref<!tpu.dma_semaphore, #tpu.memory_space<semaphore_mem>>
      tpu.enqueue_dma source(%248 : memref<1x128xf32, #tpu.memory_space<vmem>>) target(%249 : memref<1x128xf32, #tpu.memory_space<any>>) target_semaphore(%251 : memref<!tpu.dma_semaphore, #tpu.memory_space<semaphore_mem>>)
    } else {
    }
    %c2_i32 = arith.constant 2 : i32
    %c0_i32_62 = arith.constant 0 : i32
    %c0_i32_63 = arith.constant 0 : i32
    %114 = tpu.memref_slice %arg5[%c0_i32_62, %c0_i32_63] : memref<88x128xf32, #tpu.memory_space<any>> -> memref<1x128xf32, #tpu.memory_space<any>>
    %c2_i32_64 = arith.constant 2 : i32
    %c0_i32_65 = arith.constant 0 : i32
    %115 = tpu.memref_slice %arg9[%c2_i32_64, %c0_i32_65] : memref<8x128xf32, #tpu.memory_space<vmem>> -> memref<1x128xf32, #tpu.memory_space<vmem>>
    %116 = tpu.memref_slice %arg10[%c2_i32] : memref<8x!tpu.dma_semaphore, #tpu.memory_space<semaphore_mem>> -> memref<1x!tpu.dma_semaphore, #tpu.memory_space<semaphore_mem>>
    %117 = tpu.memref_squeeze %116 : memref<1x!tpu.dma_semaphore, #tpu.memory_space<semaphore_mem>> -> memref<!tpu.dma_semaphore, #tpu.memory_space<semaphore_mem>>
    tpu.wait_dma2 semaphore(%117 : memref<!tpu.dma_semaphore, #tpu.memory_space<semaphore_mem>>) src(%114 : memref<1x128xf32, #tpu.memory_space<any>>) dst(%115 : memref<1x128xf32, #tpu.memory_space<vmem>>)
    %118 = arith.index_cast %arg0 : i32 to index
    %c2_66 = arith.constant 2 : index
    %119 = memref.load %arg3[%118, %c2_66] : memref<2x8xi32, #tpu.memory_space<smem>>
    %c0_i32_67 = arith.constant 0 : i32
    %120 = arith.cmpi sge, %119, %c0_i32_67 : i32
    %121 = arith.extui %120 : i1 to i32
    %c0_i32_68 = arith.constant 0 : i32
    %122 = arith.cmpi ne, %121, %c0_i32_68 : i32
    scf.if %122 {
      %c2_i32_137 = arith.constant 2 : i32
      %c2_i32_138 = arith.constant 2 : i32
      %c0_i32_139 = arith.constant 0 : i32
      %248 = tpu.memref_slice %arg9[%c2_i32_138, %c0_i32_139] : memref<8x128xf32, #tpu.memory_space<vmem>> -> memref<1x128xf32, #tpu.memory_space<vmem>>
      %c0_i32_140 = arith.constant 0 : i32
      %249 = tpu.memref_slice %arg7[%119, %c0_i32_140] : memref<88x128xf32, #tpu.memory_space<any>> -> memref<1x128xf32, #tpu.memory_space<any>>
      %250 = tpu.memref_slice %arg11[%c2_i32_137] : memref<8x!tpu.dma_semaphore, #tpu.memory_space<semaphore_mem>> -> memref<1x!tpu.dma_semaphore, #tpu.memory_space<semaphore_mem>>
      %251 = tpu.memref_squeeze %250 : memref<1x!tpu.dma_semaphore, #tpu.memory_space<semaphore_mem>> -> memref<!tpu.dma_semaphore, #tpu.memory_space<semaphore_mem>>
      tpu.enqueue_dma source(%248 : memref<1x128xf32, #tpu.memory_space<vmem>>) target(%249 : memref<1x128xf32, #tpu.memory_space<any>>) target_semaphore(%251 : memref<!tpu.dma_semaphore, #tpu.memory_space<semaphore_mem>>)
    } else {
    }
    %c3_i32 = arith.constant 3 : i32
    %c0_i32_69 = arith.constant 0 : i32
    %c0_i32_70 = arith.constant 0 : i32
    %123 = tpu.memref_slice %arg5[%c0_i32_69, %c0_i32_70] : memref<88x128xf32, #tpu.memory_space<any>> -> memref<1x128xf32, #tpu.memory_space<any>>
    %c3_i32_71 = arith.constant 3 : i32
    %c0_i32_72 = arith.constant 0 : i32
    %124 = tpu.memref_slice %arg9[%c3_i32_71, %c0_i32_72] : memref<8x128xf32, #tpu.memory_space<vmem>> -> memref<1x128xf32, #tpu.memory_space<vmem>>
    %125 = tpu.memref_slice %arg10[%c3_i32] : memref<8x!tpu.dma_semaphore, #tpu.memory_space<semaphore_mem>> -> memref<1x!tpu.dma_semaphore, #tpu.memory_space<semaphore_mem>>
    %126 = tpu.memref_squeeze %125 : memref<1x!tpu.dma_semaphore, #tpu.memory_space<semaphore_mem>> -> memref<!tpu.dma_semaphore, #tpu.memory_space<semaphore_mem>>
    tpu.wait_dma2 semaphore(%126 : memref<!tpu.dma_semaphore, #tpu.memory_space<semaphore_mem>>) src(%123 : memref<1x128xf32, #tpu.memory_space<any>>) dst(%124 : memref<1x128xf32, #tpu.memory_space<vmem>>)
    %127 = arith.index_cast %arg0 : i32 to index
    %c3_73 = arith.constant 3 : index
    %128 = memref.load %arg3[%127, %c3_73] : memref<2x8xi32, #tpu.memory_space<smem>>
    %c0_i32_74 = arith.constant 0 : i32
    %129 = arith.cmpi sge, %128, %c0_i32_74 : i32
    %130 = arith.extui %129 : i1 to i32
    %c0_i32_75 = arith.constant 0 : i32
    %131 = arith.cmpi ne, %130, %c0_i32_75 : i32
    scf.if %131 {
      %c3_i32_137 = arith.constant 3 : i32
      %c3_i32_138 = arith.constant 3 : i32
      %c0_i32_139 = arith.constant 0 : i32
      %248 = tpu.memref_slice %arg9[%c3_i32_138, %c0_i32_139] : memref<8x128xf32, #tpu.memory_space<vmem>> -> memref<1x128xf32, #tpu.memory_space<vmem>>
      %c0_i32_140 = arith.constant 0 : i32
      %249 = tpu.memref_slice %arg7[%128, %c0_i32_140] : memref<88x128xf32, #tpu.memory_space<any>> -> memref<1x128xf32, #tpu.memory_space<any>>
      %250 = tpu.memref_slice %arg11[%c3_i32_137] : memref<8x!tpu.dma_semaphore, #tpu.memory_space<semaphore_mem>> -> memref<1x!tpu.dma_semaphore, #tpu.memory_space<semaphore_mem>>
      %251 = tpu.memref_squeeze %250 : memref<1x!tpu.dma_semaphore, #tpu.memory_space<semaphore_mem>> -> memref<!tpu.dma_semaphore, #tpu.memory_space<semaphore_mem>>
      tpu.enqueue_dma source(%248 : memref<1x128xf32, #tpu.memory_space<vmem>>) target(%249 : memref<1x128xf32, #tpu.memory_space<any>>) target_semaphore(%251 : memref<!tpu.dma_semaphore, #tpu.memory_space<semaphore_mem>>)
    } else {
    }
    %c4_i32 = arith.constant 4 : i32
    %c0_i32_76 = arith.constant 0 : i32
    %c0_i32_77 = arith.constant 0 : i32
    %132 = tpu.memref_slice %arg5[%c0_i32_76, %c0_i32_77] : memref<88x128xf32, #tpu.memory_space<any>> -> memref<1x128xf32, #tpu.memory_space<any>>
    %c4_i32_78 = arith.constant 4 : i32
    %c0_i32_79 = arith.constant 0 : i32
    %133 = tpu.memref_slice %arg9[%c4_i32_78, %c0_i32_79] : memref<8x128xf32, #tpu.memory_space<vmem>> -> memref<1x128xf32, #tpu.memory_space<vmem>>
    %134 = tpu.memref_slice %arg10[%c4_i32] : memref<8x!tpu.dma_semaphore, #tpu.memory_space<semaphore_mem>> -> memref<1x!tpu.dma_semaphore, #tpu.memory_space<semaphore_mem>>
    %135 = tpu.memref_squeeze %134 : memref<1x!tpu.dma_semaphore, #tpu.memory_space<semaphore_mem>> -> memref<!tpu.dma_semaphore, #tpu.memory_space<semaphore_mem>>
    tpu.wait_dma2 semaphore(%135 : memref<!tpu.dma_semaphore, #tpu.memory_space<semaphore_mem>>) src(%132 : memref<1x128xf32, #tpu.memory_space<any>>) dst(%133 : memref<1x128xf32, #tpu.memory_space<vmem>>)
    %136 = arith.index_cast %arg0 : i32 to index
    %c4_80 = arith.constant 4 : index
    %137 = memref.load %arg3[%136, %c4_80] : memref<2x8xi32, #tpu.memory_space<smem>>
    %c0_i32_81 = arith.constant 0 : i32
    %138 = arith.cmpi sge, %137, %c0_i32_81 : i32
    %139 = arith.extui %138 : i1 to i32
    %c0_i32_82 = arith.constant 0 : i32
    %140 = arith.cmpi ne, %139, %c0_i32_82 : i32
    scf.if %140 {
      %c4_i32_137 = arith.constant 4 : i32
      %c4_i32_138 = arith.constant 4 : i32
      %c0_i32_139 = arith.constant 0 : i32
      %248 = tpu.memref_slice %arg9[%c4_i32_138, %c0_i32_139] : memref<8x128xf32, #tpu.memory_space<vmem>> -> memref<1x128xf32, #tpu.memory_space<vmem>>
      %c0_i32_140 = arith.constant 0 : i32
      %249 = tpu.memref_slice %arg7[%137, %c0_i32_140] : memref<88x128xf32, #tpu.memory_space<any>> -> memref<1x128xf32, #tpu.memory_space<any>>
      %250 = tpu.memref_slice %arg11[%c4_i32_137] : memref<8x!tpu.dma_semaphore, #tpu.memory_space<semaphore_mem>> -> memref<1x!tpu.dma_semaphore, #tpu.memory_space<semaphore_mem>>
      %251 = tpu.memref_squeeze %250 : memref<1x!tpu.dma_semaphore, #tpu.memory_space<semaphore_mem>> -> memref<!tpu.dma_semaphore, #tpu.memory_space<semaphore_mem>>
      tpu.enqueue_dma source(%248 : memref<1x128xf32, #tpu.memory_space<vmem>>) target(%249 : memref<1x128xf32, #tpu.memory_space<any>>) target_semaphore(%251 : memref<!tpu.dma_semaphore, #tpu.memory_space<semaphore_mem>>)
    } else {
    }
    %c5_i32 = arith.constant 5 : i32
    %c0_i32_83 = arith.constant 0 : i32
    %c0_i32_84 = arith.constant 0 : i32
    %141 = tpu.memref_slice %arg5[%c0_i32_83, %c0_i32_84] : memref<88x128xf32, #tpu.memory_space<any>> -> memref<1x128xf32, #tpu.memory_space<any>>
    %c5_i32_85 = arith.constant 5 : i32
    %c0_i32_86 = arith.constant 0 : i32
    %142 = tpu.memref_slice %arg9[%c5_i32_85, %c0_i32_86] : memref<8x128xf32, #tpu.memory_space<vmem>> -> memref<1x128xf32, #tpu.memory_space<vmem>>
    %143 = tpu.memref_slice %arg10[%c5_i32] : memref<8x!tpu.dma_semaphore, #tpu.memory_space<semaphore_mem>> -> memref<1x!tpu.dma_semaphore, #tpu.memory_space<semaphore_mem>>
    %144 = tpu.memref_squeeze %143 : memref<1x!tpu.dma_semaphore, #tpu.memory_space<semaphore_mem>> -> memref<!tpu.dma_semaphore, #tpu.memory_space<semaphore_mem>>
    tpu.wait_dma2 semaphore(%144 : memref<!tpu.dma_semaphore, #tpu.memory_space<semaphore_mem>>) src(%141 : memref<1x128xf32, #tpu.memory_space<any>>) dst(%142 : memref<1x128xf32, #tpu.memory_space<vmem>>)
    %145 = arith.index_cast %arg0 : i32 to index
    %c5_87 = arith.constant 5 : index
    %146 = memref.load %arg3[%145, %c5_87] : memref<2x8xi32, #tpu.memory_space<smem>>
    %c0_i32_88 = arith.constant 0 : i32
    %147 = arith.cmpi sge, %146, %c0_i32_88 : i32
    %148 = arith.extui %147 : i1 to i32
    %c0_i32_89 = arith.constant 0 : i32
    %149 = arith.cmpi ne, %148, %c0_i32_89 : i32
    scf.if %149 {
      %c5_i32_137 = arith.constant 5 : i32
      %c5_i32_138 = arith.constant 5 : i32
      %c0_i32_139 = arith.constant 0 : i32
      %248 = tpu.memref_slice %arg9[%c5_i32_138, %c0_i32_139] : memref<8x128xf32, #tpu.memory_space<vmem>> -> memref<1x128xf32, #tpu.memory_space<vmem>>
      %c0_i32_140 = arith.constant 0 : i32
      %249 = tpu.memref_slice %arg7[%146, %c0_i32_140] : memref<88x128xf32, #tpu.memory_space<any>> -> memref<1x128xf32, #tpu.memory_space<any>>
      %250 = tpu.memref_slice %arg11[%c5_i32_137] : memref<8x!tpu.dma_semaphore, #tpu.memory_space<semaphore_mem>> -> memref<1x!tpu.dma_semaphore, #tpu.memory_space<semaphore_mem>>
      %251 = tpu.memref_squeeze %250 : memref<1x!tpu.dma_semaphore, #tpu.memory_space<semaphore_mem>> -> memref<!tpu.dma_semaphore, #tpu.memory_space<semaphore_mem>>
      tpu.enqueue_dma source(%248 : memref<1x128xf32, #tpu.memory_space<vmem>>) target(%249 : memref<1x128xf32, #tpu.memory_space<any>>) target_semaphore(%251 : memref<!tpu.dma_semaphore, #tpu.memory_space<semaphore_mem>>)
    } else {
    }
    %c6_i32 = arith.constant 6 : i32
    %c0_i32_90 = arith.constant 0 : i32
    %c0_i32_91 = arith.constant 0 : i32
    %150 = tpu.memref_slice %arg5[%c0_i32_90, %c0_i32_91] : memref<88x128xf32, #tpu.memory_space<any>> -> memref<1x128xf32, #tpu.memory_space<any>>
    %c6_i32_92 = arith.constant 6 : i32
    %c0_i32_93 = arith.constant 0 : i32
    %151 = tpu.memref_slice %arg9[%c6_i32_92, %c0_i32_93] : memref<8x128xf32, #tpu.memory_space<vmem>> -> memref<1x128xf32, #tpu.memory_space<vmem>>
    %152 = tpu.memref_slice %arg10[%c6_i32] : memref<8x!tpu.dma_semaphore, #tpu.memory_space<semaphore_mem>> -> memref<1x!tpu.dma_semaphore, #tpu.memory_space<semaphore_mem>>
    %153 = tpu.memref_squeeze %152 : memref<1x!tpu.dma_semaphore, #tpu.memory_space<semaphore_mem>> -> memref<!tpu.dma_semaphore, #tpu.memory_space<semaphore_mem>>
    tpu.wait_dma2 semaphore(%153 : memref<!tpu.dma_semaphore, #tpu.memory_space<semaphore_mem>>) src(%150 : memref<1x128xf32, #tpu.memory_space<any>>) dst(%151 : memref<1x128xf32, #tpu.memory_space<vmem>>)
    %154 = arith.index_cast %arg0 : i32 to index
    %c6_94 = arith.constant 6 : index
    %155 = memref.load %arg3[%154, %c6_94] : memref<2x8xi32, #tpu.memory_space<smem>>
    %c0_i32_95 = arith.constant 0 : i32
    %156 = arith.cmpi sge, %155, %c0_i32_95 : i32
    %157 = arith.extui %156 : i1 to i32
    %c0_i32_96 = arith.constant 0 : i32
    %158 = arith.cmpi ne, %157, %c0_i32_96 : i32
    scf.if %158 {
      %c6_i32_137 = arith.constant 6 : i32
      %c6_i32_138 = arith.constant 6 : i32
      %c0_i32_139 = arith.constant 0 : i32
      %248 = tpu.memref_slice %arg9[%c6_i32_138, %c0_i32_139] : memref<8x128xf32, #tpu.memory_space<vmem>> -> memref<1x128xf32, #tpu.memory_space<vmem>>
      %c0_i32_140 = arith.constant 0 : i32
      %249 = tpu.memref_slice %arg7[%155, %c0_i32_140] : memref<88x128xf32, #tpu.memory_space<any>> -> memref<1x128xf32, #tpu.memory_space<any>>
      %250 = tpu.memref_slice %arg11[%c6_i32_137] : memref<8x!tpu.dma_semaphore, #tpu.memory_space<semaphore_mem>> -> memref<1x!tpu.dma_semaphore, #tpu.memory_space<semaphore_mem>>
      %251 = tpu.memref_squeeze %250 : memref<1x!tpu.dma_semaphore, #tpu.memory_space<semaphore_mem>> -> memref<!tpu.dma_semaphore, #tpu.memory_space<semaphore_mem>>
      tpu.enqueue_dma source(%248 : memref<1x128xf32, #tpu.memory_space<vmem>>) target(%249 : memref<1x128xf32, #tpu.memory_space<any>>) target_semaphore(%251 : memref<!tpu.dma_semaphore, #tpu.memory_space<semaphore_mem>>)
    } else {
    }
    %c7_i32 = arith.constant 7 : i32
    %c0_i32_97 = arith.constant 0 : i32
    %c0_i32_98 = arith.constant 0 : i32
    %159 = tpu.memref_slice %arg5[%c0_i32_97, %c0_i32_98] : memref<88x128xf32, #tpu.memory_space<any>> -> memref<1x128xf32, #tpu.memory_space<any>>
    %c7_i32_99 = arith.constant 7 : i32
    %c0_i32_100 = arith.constant 0 : i32
    %160 = tpu.memref_slice %arg9[%c7_i32_99, %c0_i32_100] : memref<8x128xf32, #tpu.memory_space<vmem>> -> memref<1x128xf32, #tpu.memory_space<vmem>>
    %161 = tpu.memref_slice %arg10[%c7_i32] : memref<8x!tpu.dma_semaphore, #tpu.memory_space<semaphore_mem>> -> memref<1x!tpu.dma_semaphore, #tpu.memory_space<semaphore_mem>>
    %162 = tpu.memref_squeeze %161 : memref<1x!tpu.dma_semaphore, #tpu.memory_space<semaphore_mem>> -> memref<!tpu.dma_semaphore, #tpu.memory_space<semaphore_mem>>
    tpu.wait_dma2 semaphore(%162 : memref<!tpu.dma_semaphore, #tpu.memory_space<semaphore_mem>>) src(%159 : memref<1x128xf32, #tpu.memory_space<any>>) dst(%160 : memref<1x128xf32, #tpu.memory_space<vmem>>)
    %163 = arith.index_cast %arg0 : i32 to index
    %c7_101 = arith.constant 7 : index
    %164 = memref.load %arg3[%163, %c7_101] : memref<2x8xi32, #tpu.memory_space<smem>>
    %c0_i32_102 = arith.constant 0 : i32
    %165 = arith.cmpi sge, %164, %c0_i32_102 : i32
    %166 = arith.extui %165 : i1 to i32
    %c0_i32_103 = arith.constant 0 : i32
    %167 = arith.cmpi ne, %166, %c0_i32_103 : i32
    scf.if %167 {
      %c7_i32_137 = arith.constant 7 : i32
      %c7_i32_138 = arith.constant 7 : i32
      %c0_i32_139 = arith.constant 0 : i32
      %248 = tpu.memref_slice %arg9[%c7_i32_138, %c0_i32_139] : memref<8x128xf32, #tpu.memory_space<vmem>> -> memref<1x128xf32, #tpu.memory_space<vmem>>
      %c0_i32_140 = arith.constant 0 : i32
      %249 = tpu.memref_slice %arg7[%164, %c0_i32_140] : memref<88x128xf32, #tpu.memory_space<any>> -> memref<1x128xf32, #tpu.memory_space<any>>
      %250 = tpu.memref_slice %arg11[%c7_i32_137] : memref<8x!tpu.dma_semaphore, #tpu.memory_space<semaphore_mem>> -> memref<1x!tpu.dma_semaphore, #tpu.memory_space<semaphore_mem>>
      %251 = tpu.memref_squeeze %250 : memref<1x!tpu.dma_semaphore, #tpu.memory_space<semaphore_mem>> -> memref<!tpu.dma_semaphore, #tpu.memory_space<semaphore_mem>>
      tpu.enqueue_dma source(%248 : memref<1x128xf32, #tpu.memory_space<vmem>>) target(%249 : memref<1x128xf32, #tpu.memory_space<any>>) target_semaphore(%251 : memref<!tpu.dma_semaphore, #tpu.memory_space<semaphore_mem>>)
    } else {
    }
    %168 = tpu.iota {dimensions = array<i32: 1>} : vector<1x8xi32>
    %c-1_i32 = arith.constant -1 : i32
    %169 = vector.broadcast %c-1_i32 : i32 to vector<1x8xi32>
    %170 = arith.index_cast %arg0 : i32 to index
    %c0_104 = arith.constant 0 : index
    %171 = memref.load %arg4[%170, %c0_104] : memref<2x4xi32, #tpu.memory_space<smem>>
    %172 = vector.broadcast %171 : i32 to vector<1x8xi32>
    %173 = arith.cmpi sge, %168, %172 : vector<1x8xi32>
    %174 = arith.extui %173 : vector<1x8xi1> to vector<1x8xi32>
    %175 = arith.addi %169, %174 : vector<1x8xi32>
    %176 = arith.index_cast %arg0 : i32 to index
    %c1_105 = arith.constant 1 : index
    %177 = memref.load %arg4[%176, %c1_105] : memref<2x4xi32, #tpu.memory_space<smem>>
    %178 = vector.broadcast %177 : i32 to vector<1x8xi32>
    %179 = arith.cmpi sge, %168, %178 : vector<1x8xi32>
    %180 = arith.extui %179 : vector<1x8xi1> to vector<1x8xi32>
    %181 = arith.addi %175, %180 : vector<1x8xi32>
    %182 = arith.index_cast %arg0 : i32 to index
    %c2_106 = arith.constant 2 : index
    %183 = memref.load %arg4[%182, %c2_106] : memref<2x4xi32, #tpu.memory_space<smem>>
    %184 = vector.broadcast %183 : i32 to vector<1x8xi32>
    %185 = arith.cmpi sge, %168, %184 : vector<1x8xi32>
    %186 = arith.extui %185 : vector<1x8xi1> to vector<1x8xi32>
    %187 = arith.addi %181, %186 : vector<1x8xi32>
    %188 = arith.index_cast %arg0 : i32 to index
    %c3_107 = arith.constant 3 : index
    %189 = memref.load %arg4[%188, %c3_107] : memref<2x4xi32, #tpu.memory_space<smem>>
    %190 = vector.broadcast %189 : i32 to vector<1x8xi32>
    %191 = arith.cmpi sge, %168, %190 : vector<1x8xi32>
    %192 = arith.extui %191 : vector<1x8xi1> to vector<1x8xi32>
    %193 = arith.addi %187, %192 : vector<1x8xi32>
    %c8_i32 = arith.constant 8 : i32
    %194 = vector.broadcast %c8_i32 : i32 to vector<1x8xi32>
    %195 = arith.cmpi slt, %168, %194 : vector<1x8xi32>
    %196 = tpu.iota {dimensions = array<i32: 0>} : vector<8x8xi32>
    %197 = vector.broadcast %193 : vector<1x8xi32> to vector<8x8xi32>
    %198 = arith.cmpi eq, %197, %196 : vector<8x8xi32>
    %199 = vector.broadcast %195 : vector<1x8xi1> to vector<8x8xi1>
    %200 = arith.andi %198, %199 : vector<8x8xi1>
    %201 = arith.extui %200 : vector<8x8xi1> to vector<8x8xi32>
    %202 = arith.sitofp %201 : vector<8x8xi32> to vector<8x8xf32>
    %c0_108 = arith.constant 0 : index
    %c0_109 = arith.constant 0 : index
    %203 = vector.load %arg9[%c0_108, %c0_109] : memref<8x128xf32, #tpu.memory_space<vmem>>, vector<8x128xf32>
    %cst = arith.constant dense<0.000000e+00> : vector<8x128xf32>
    %204 = tpu.matmul %202, %203, %cst {dimension_numbers = #tpu.dot_dimension_numbers<[1], [0], [0], [1], [0, 0, 1, 1], [], []>} : vector<8x8xf32>, vector<8x128xf32>, vector<8x128xf32> -> vector<8x128xf32>
    %c0_110 = arith.constant 0 : index
    %c0_111 = arith.constant 0 : index
    %c0_112 = arith.constant 0 : index
    %205 = vector.load %arg8[%c0_110, %c0_111, %c0_112] : memref<1x8x128xf32, #tpu.memory_space<vmem>>, vector<1x8x128xf32>
    %206 = vector.shape_cast %205 : vector<1x8x128xf32> to vector<8x128xf32>
    %207 = vector.shape_cast %204 : vector<8x128xf32> to vector<1x8x128xf32>
    tpu.vector_store %arg8[%c0_110, %c0_111, %c0_112], %207 {strides = array<i32>} : memref<1x8x128xf32, #tpu.memory_space<vmem>>, vector<1x8x128xf32>,
    %208 = arith.index_cast %arg0 : i32 to index
    %c0_113 = arith.constant 0 : index
    %209 = memref.load %arg3[%208, %c0_113] : memref<2x8xi32, #tpu.memory_space<smem>>
    %c0_i32_114 = arith.constant 0 : i32
    %210 = arith.cmpi sge, %209, %c0_i32_114 : i32
    %211 = arith.extui %210 : i1 to i32
    %c0_i32_115 = arith.constant 0 : i32
    %212 = arith.cmpi ne, %211, %c0_i32_115 : i32
    scf.if %212 {
      %c0_i32_137 = arith.constant 0 : i32
      %c0_i32_138 = arith.constant 0 : i32
      %c0_i32_139 = arith.constant 0 : i32
      %248 = tpu.memref_slice %arg9[%c0_i32_138, %c0_i32_139] : memref<8x128xf32, #tpu.memory_space<vmem>> -> memref<1x128xf32, #tpu.memory_space<vmem>>
      %c0_i32_140 = arith.constant 0 : i32
      %c0_i32_141 = arith.constant 0 : i32
      %249 = tpu.memref_slice %arg7[%c0_i32_140, %c0_i32_141] : memref<88x128xf32, #tpu.memory_space<any>> -> memref<1x128xf32, #tpu.memory_space<any>>
      %250 = tpu.memref_slice %arg11[%c0_i32_137] : memref<8x!tpu.dma_semaphore, #tpu.memory_space<semaphore_mem>> -> memref<1x!tpu.dma_semaphore, #tpu.memory_space<semaphore_mem>>
      %251 = tpu.memref_squeeze %250 : memref<1x!tpu.dma_semaphore, #tpu.memory_space<semaphore_mem>> -> memref<!tpu.dma_semaphore, #tpu.memory_space<semaphore_mem>>
      tpu.wait_dma2 semaphore(%251 : memref<!tpu.dma_semaphore, #tpu.memory_space<semaphore_mem>>) src(%248 : memref<1x128xf32, #tpu.memory_space<vmem>>) dst(%249 : memref<1x128xf32, #tpu.memory_space<any>>)
    } else {
    }
    %213 = arith.index_cast %arg0 : i32 to index
    %c1_116 = arith.constant 1 : index
    %214 = memref.load %arg3[%213, %c1_116] : memref<2x8xi32, #tpu.memory_space<smem>>
    %c0_i32_117 = arith.constant 0 : i32
    %215 = arith.cmpi sge, %214, %c0_i32_117 : i32
    %216 = arith.extui %215 : i1 to i32
    %c0_i32_118 = arith.constant 0 : i32
    %217 = arith.cmpi ne, %216, %c0_i32_118 : i32
    scf.if %217 {
      %c1_i32_137 = arith.constant 1 : i32
      %c1_i32_138 = arith.constant 1 : i32
      %c0_i32_139 = arith.constant 0 : i32
      %248 = tpu.memref_slice %arg9[%c1_i32_138, %c0_i32_139] : memref<8x128xf32, #tpu.memory_space<vmem>> -> memref<1x128xf32, #tpu.memory_space<vmem>>
      %c0_i32_140 = arith.constant 0 : i32
      %c0_i32_141 = arith.constant 0 : i32
      %249 = tpu.memref_slice %arg7[%c0_i32_140, %c0_i32_141] : memref<88x128xf32, #tpu.memory_space<any>> -> memref<1x128xf32, #tpu.memory_space<any>>
      %250 = tpu.memref_slice %arg11[%c1_i32_137] : memref<8x!tpu.dma_semaphore, #tpu.memory_space<semaphore_mem>> -> memref<1x!tpu.dma_semaphore, #tpu.memory_space<semaphore_mem>>
      %251 = tpu.memref_squeeze %250 : memref<1x!tpu.dma_semaphore, #tpu.memory_space<semaphore_mem>> -> memref<!tpu.dma_semaphore, #tpu.memory_space<semaphore_mem>>
      tpu.wait_dma2 semaphore(%251 : memref<!tpu.dma_semaphore, #tpu.memory_space<semaphore_mem>>) src(%248 : memref<1x128xf32, #tpu.memory_space<vmem>>) dst(%249 : memref<1x128xf32, #tpu.memory_space<any>>)
    } else {
    }
    %218 = arith.index_cast %arg0 : i32 to index
    %c2_119 = arith.constant 2 : index
    %219 = memref.load %arg3[%218, %c2_119] : memref<2x8xi32, #tpu.memory_space<smem>>
    %c0_i32_120 = arith.constant 0 : i32
    %220 = arith.cmpi sge, %219, %c0_i32_120 : i32
    %221 = arith.extui %220 : i1 to i32
    %c0_i32_121 = arith.constant 0 : i32
    %222 = arith.cmpi ne, %221, %c0_i32_121 : i32
    scf.if %222 {
      %c2_i32_137 = arith.constant 2 : i32
      %c2_i32_138 = arith.constant 2 : i32
      %c0_i32_139 = arith.constant 0 : i32
      %248 = tpu.memref_slice %arg9[%c2_i32_138, %c0_i32_139] : memref<8x128xf32, #tpu.memory_space<vmem>> -> memref<1x128xf32, #tpu.memory_space<vmem>>
      %c0_i32_140 = arith.constant 0 : i32
      %c0_i32_141 = arith.constant 0 : i32
      %249 = tpu.memref_slice %arg7[%c0_i32_140, %c0_i32_141] : memref<88x128xf32, #tpu.memory_space<any>> -> memref<1x128xf32, #tpu.memory_space<any>>
      %250 = tpu.memref_slice %arg11[%c2_i32_137] : memref<8x!tpu.dma_semaphore, #tpu.memory_space<semaphore_mem>> -> memref<1x!tpu.dma_semaphore, #tpu.memory_space<semaphore_mem>>
      %251 = tpu.memref_squeeze %250 : memref<1x!tpu.dma_semaphore, #tpu.memory_space<semaphore_mem>> -> memref<!tpu.dma_semaphore, #tpu.memory_space<semaphore_mem>>
      tpu.wait_dma2 semaphore(%251 : memref<!tpu.dma_semaphore, #tpu.memory_space<semaphore_mem>>) src(%248 : memref<1x128xf32, #tpu.memory_space<vmem>>) dst(%249 : memref<1x128xf32, #tpu.memory_space<any>>)
    } else {
    }
    %223 = arith.index_cast %arg0 : i32 to index
    %c3_122 = arith.constant 3 : index
    %224 = memref.load %arg3[%223, %c3_122] : memref<2x8xi32, #tpu.memory_space<smem>>
    %c0_i32_123 = arith.constant 0 : i32
    %225 = arith.cmpi sge, %224, %c0_i32_123 : i32
    %226 = arith.extui %225 : i1 to i32
    %c0_i32_124 = arith.constant 0 : i32
    %227 = arith.cmpi ne, %226, %c0_i32_124 : i32
    scf.if %227 {
      %c3_i32_137 = arith.constant 3 : i32
      %c3_i32_138 = arith.constant 3 : i32
      %c0_i32_139 = arith.constant 0 : i32
      %248 = tpu.memref_slice %arg9[%c3_i32_138, %c0_i32_139] : memref<8x128xf32, #tpu.memory_space<vmem>> -> memref<1x128xf32, #tpu.memory_space<vmem>>
      %c0_i32_140 = arith.constant 0 : i32
      %c0_i32_141 = arith.constant 0 : i32
      %249 = tpu.memref_slice %arg7[%c0_i32_140, %c0_i32_141] : memref<88x128xf32, #tpu.memory_space<any>> -> memref<1x128xf32, #tpu.memory_space<any>>
      %250 = tpu.memref_slice %arg11[%c3_i32_137] : memref<8x!tpu.dma_semaphore, #tpu.memory_space<semaphore_mem>> -> memref<1x!tpu.dma_semaphore, #tpu.memory_space<semaphore_mem>>
      %251 = tpu.memref_squeeze %250 : memref<1x!tpu.dma_semaphore, #tpu.memory_space<semaphore_mem>> -> memref<!tpu.dma_semaphore, #tpu.memory_space<semaphore_mem>>
      tpu.wait_dma2 semaphore(%251 : memref<!tpu.dma_semaphore, #tpu.memory_space<semaphore_mem>>) src(%248 : memref<1x128xf32, #tpu.memory_space<vmem>>) dst(%249 : memref<1x128xf32, #tpu.memory_space<any>>)
    } else {
    }
    %228 = arith.index_cast %arg0 : i32 to index
    %c4_125 = arith.constant 4 : index
    %229 = memref.load %arg3[%228, %c4_125] : memref<2x8xi32, #tpu.memory_space<smem>>
    %c0_i32_126 = arith.constant 0 : i32
    %230 = arith.cmpi sge, %229, %c0_i32_126 : i32
    %231 = arith.extui %230 : i1 to i32
    %c0_i32_127 = arith.constant 0 : i32
    %232 = arith.cmpi ne, %231, %c0_i32_127 : i32
    scf.if %232 {
      %c4_i32_137 = arith.constant 4 : i32
      %c4_i32_138 = arith.constant 4 : i32
      %c0_i32_139 = arith.constant 0 : i32
      %248 = tpu.memref_slice %arg9[%c4_i32_138, %c0_i32_139] : memref<8x128xf32, #tpu.memory_space<vmem>> -> memref<1x128xf32, #tpu.memory_space<vmem>>
      %c0_i32_140 = arith.constant 0 : i32
      %c0_i32_141 = arith.constant 0 : i32
      %249 = tpu.memref_slice %arg7[%c0_i32_140, %c0_i32_141] : memref<88x128xf32, #tpu.memory_space<any>> -> memref<1x128xf32, #tpu.memory_space<any>>
      %250 = tpu.memref_slice %arg11[%c4_i32_137] : memref<8x!tpu.dma_semaphore, #tpu.memory_space<semaphore_mem>> -> memref<1x!tpu.dma_semaphore, #tpu.memory_space<semaphore_mem>>
      %251 = tpu.memref_squeeze %250 : memref<1x!tpu.dma_semaphore, #tpu.memory_space<semaphore_mem>> -> memref<!tpu.dma_semaphore, #tpu.memory_space<semaphore_mem>>
      tpu.wait_dma2 semaphore(%251 : memref<!tpu.dma_semaphore, #tpu.memory_space<semaphore_mem>>) src(%248 : memref<1x128xf32, #tpu.memory_space<vmem>>) dst(%249 : memref<1x128xf32, #tpu.memory_space<any>>)
    } else {
    }
    %233 = arith.index_cast %arg0 : i32 to index
    %c5_128 = arith.constant 5 : index
    %234 = memref.load %arg3[%233, %c5_128] : memref<2x8xi32, #tpu.memory_space<smem>>
    %c0_i32_129 = arith.constant 0 : i32
    %235 = arith.cmpi sge, %234, %c0_i32_129 : i32
    %236 = arith.extui %235 : i1 to i32
    %c0_i32_130 = arith.constant 0 : i32
    %237 = arith.cmpi ne, %236, %c0_i32_130 : i32
    scf.if %237 {
      %c5_i32_137 = arith.constant 5 : i32
      %c5_i32_138 = arith.constant 5 : i32
      %c0_i32_139 = arith.constant 0 : i32
      %248 = tpu.memref_slice %arg9[%c5_i32_138, %c0_i32_139] : memref<8x128xf32, #tpu.memory_space<vmem>> -> memref<1x128xf32, #tpu.memory_space<vmem>>
      %c0_i32_140 = arith.constant 0 : i32
      %c0_i32_141 = arith.constant 0 : i32
      %249 = tpu.memref_slice %arg7[%c0_i32_140, %c0_i32_141] : memref<88x128xf32, #tpu.memory_space<any>> -> memref<1x128xf32, #tpu.memory_space<any>>
      %250 = tpu.memref_slice %arg11[%c5_i32_137] : memref<8x!tpu.dma_semaphore, #tpu.memory_space<semaphore_mem>> -> memref<1x!tpu.dma_semaphore, #tpu.memory_space<semaphore_mem>>
      %251 = tpu.memref_squeeze %250 : memref<1x!tpu.dma_semaphore, #tpu.memory_space<semaphore_mem>> -> memref<!tpu.dma_semaphore, #tpu.memory_space<semaphore_mem>>
      tpu.wait_dma2 semaphore(%251 : memref<!tpu.dma_semaphore, #tpu.memory_space<semaphore_mem>>) src(%248 : memref<1x128xf32, #tpu.memory_space<vmem>>) dst(%249 : memref<1x128xf32, #tpu.memory_space<any>>)
    } else {
    }
    %238 = arith.index_cast %arg0 : i32 to index
    %c6_131 = arith.constant 6 : index
    %239 = memref.load %arg3[%238, %c6_131] : memref<2x8xi32, #tpu.memory_space<smem>>
    %c0_i32_132 = arith.constant 0 : i32
    %240 = arith.cmpi sge, %239, %c0_i32_132 : i32
    %241 = arith.extui %240 : i1 to i32
    %c0_i32_133 = arith.constant 0 : i32
    %242 = arith.cmpi ne, %241, %c0_i32_133 : i32
    scf.if %242 {
      %c6_i32_137 = arith.constant 6 : i32
      %c6_i32_138 = arith.constant 6 : i32
      %c0_i32_139 = arith.constant 0 : i32
      %248 = tpu.memref_slice %arg9[%c6_i32_138, %c0_i32_139] : memref<8x128xf32, #tpu.memory_space<vmem>> -> memref<1x128xf32, #tpu.memory_space<vmem>>
      %c0_i32_140 = arith.constant 0 : i32
      %c0_i32_141 = arith.constant 0 : i32
      %249 = tpu.memref_slice %arg7[%c0_i32_140, %c0_i32_141] : memref<88x128xf32, #tpu.memory_space<any>> -> memref<1x128xf32, #tpu.memory_space<any>>
      %250 = tpu.memref_slice %arg11[%c6_i32_137] : memref<8x!tpu.dma_semaphore, #tpu.memory_space<semaphore_mem>> -> memref<1x!tpu.dma_semaphore, #tpu.memory_space<semaphore_mem>>
      %251 = tpu.memref_squeeze %250 : memref<1x!tpu.dma_semaphore, #tpu.memory_space<semaphore_mem>> -> memref<!tpu.dma_semaphore, #tpu.memory_space<semaphore_mem>>
      tpu.wait_dma2 semaphore(%251 : memref<!tpu.dma_semaphore, #tpu.memory_space<semaphore_mem>>) src(%248 : memref<1x128xf32, #tpu.memory_space<vmem>>) dst(%249 : memref<1x128xf32, #tpu.memory_space<any>>)
    } else {
    }
    %243 = arith.index_cast %arg0 : i32 to index
    %c7_134 = arith.constant 7 : index
    %244 = memref.load %arg3[%243, %c7_134] : memref<2x8xi32, #tpu.memory_space<smem>>
    %c0_i32_135 = arith.constant 0 : i32
    %245 = arith.cmpi sge, %244, %c0_i32_135 : i32
    %246 = arith.extui %245 : i1 to i32
    %c0_i32_136 = arith.constant 0 : i32
    %247 = arith.cmpi ne, %246, %c0_i32_136 : i32
    scf.if %247 {
      %c7_i32_137 = arith.constant 7 : i32
      %c7_i32_138 = arith.constant 7 : i32
      %c0_i32_139 = arith.constant 0 : i32
      %248 = tpu.memref_slice %arg9[%c7_i32_138, %c0_i32_139] : memref<8x128xf32, #tpu.memory_space<vmem>> -> memref<1x128xf32, #tpu.memory_space<vmem>>
      %c0_i32_140 = arith.constant 0 : i32
      %c0_i32_141 = arith.constant 0 : i32
      %249 = tpu.memref_slice %arg7[%c0_i32_140, %c0_i32_141] : memref<88x128xf32, #tpu.memory_space<any>> -> memref<1x128xf32, #tpu.memory_space<any>>
      %250 = tpu.memref_slice %arg11[%c7_i32_137] : memref<8x!tpu.dma_semaphore, #tpu.memory_space<semaphore_mem>> -> memref<1x!tpu.dma_semaphore, #tpu.memory_space<semaphore_mem>>
      %251 = tpu.memref_squeeze %250 : memref<1x!tpu.dma_semaphore, #tpu.memory_space<semaphore_mem>> -> memref<!tpu.dma_semaphore, #tpu.memory_space<semaphore_mem>>
      tpu.wait_dma2 semaphore(%251 : memref<!tpu.dma_semaphore, #tpu.memory_space<semaphore_mem>>) src(%248 : memref<1x128xf32, #tpu.memory_space<vmem>>) dst(%249 : memref<1x128xf32, #tpu.memory_space<any>>)
    } else {
    }
    return
  }
  func.func @transform_3(%arg0: i32, %arg1: memref<2x8xi32, #tpu.memory_space<smem>>, %arg2: memref<2x8xi32, #tpu.memory_space<smem>>, %arg3: memref<2x8xi32, #tpu.memory_space<smem>>, %arg4: memref<2x4xi32, #tpu.memory_space<smem>>) -> (i32, i32, i32) {
    %c0_i32 = arith.constant 0 : i32
    %c0_i32_0 = arith.constant 0 : i32
    %c0_i32_1 = arith.constant 0 : i32
    return %arg0, %c0_i32, %c0_i32_0 : i32, i32, i32
  }
}

</mosaic_0001>

<bundles_post_ra>
// kernel: _forward_impl.1
= control target key start
LH: loop header
LB: loop body
LE: loop exit
PB: predicated region body
PF: predicated region fallthrough
CT: control target
= control target key end

     0   :  { %s2544_s0 = inlined_call_operand.vmem [shape: s32[2,8], index: 0, kind: input, shape index: {}]   ;;  %s2545_s4 = inlined_call_operand.vmem [shape: f32[88,128], index: 4, kind: input, shape index: {}, may-alias: {4,6}]   ;;  %s2546_s5 = inlined_call_operand.vmem [shape: f32[110,128], index: 5, kind: input, shape index: {}]   ;;  %s2547_s6 = inlined_call_operand.vmem [shape: f32[88,128], index: 6, kind: output, shape index: {0}, may-alias: {4,6}]   ;;  %s2548_s7 = inlined_call_operand.hbm [shape: f32[2,8,128], index: 7, kind: output, shape index: {1}]   ;;  %s2549_s1 = inlined_call_operand.vmem [shape: s32[2,8], index: 1, kind: input, shape index: {}]   ;;  %s2550_s2 = inlined_call_operand.vmem [shape: s32[2,8], index: 2, kind: input, shape index: {}]   ;;  %s2551_s3 = inlined_call_operand.vmem [shape: s32[2,4], index: 3, kind: input, shape index: {}]  }
   0x1   :  { %s13_s26 = sshll.u32 %s2544_s0, 4  ;;  %s17_s29 = sshll.u32 %s2549_s1, 4  ;;  %s14_s26 = int_to_ptr.vmem [resolvable:$true] %s13_s26  ;;  %s18_s29 = int_to_ptr.vmem [resolvable:$true] %s17_s29 }
   0x2   :  { %s2104_s30 = scalar_lea.vmem %s14_s26, 32  ;;  %p2109_p1 = scmp.lt.s32.totalorder %s14_s26, %s14_s26 }
   0x3   :  { %p2105_p0 = scmp.ne.s32.totalorder %s14_s26, %s2104_s30  ;;  %p2110_p2 = scmp.lt.s32.totalorder %s2104_s30, %s2104_s30 }
   0x5   :  { %p2111_p3 = por %p2110_p2, %p2109_p1 }
   0x7   :  { %p2112_p4 = pnand %p2111_p3, %p2105_p0 }
   0x9   :  { %2115 = shalt.err (!%p2112_p4)  }
   0xa   :  { %s2258_s8 = smov [#allocation6]   ;;  %s2116_s9 = scalar_lea.vmem %s18_s29, 32 }
   0xb   :  { %16 = dma.vmem_to_smem %s14_s26, 32, %s2258_s8, [#allocation5] }
   0xc   :  { %p2117_p5 = scmp.ne.s32.totalorder %s18_s29, %s2116_s9  ;;  %p2121_p6 = scmp.lt.s32.totalorder %s18_s29, %s18_s29 }
   0xd   :  { %p2122_p7 = scmp.lt.s32.totalorder %s2116_s9, %s2116_s9 }
   0xf   :  { %p2123_p8 = por %p2122_p7, %p2121_p6 }
  0x11   :  { %p2124_p9 = pnand %p2123_p8, %p2117_p5 }
  0x13   :  { %2127 = shalt.err (!%p2124_p9)  }
  0x14   :  { %s2259_s0 = smov [#allocation7]   ;;  %s21_s11 = sshll.u32 %s2550_s2, 4  ;;  %s22_s11 = int_to_ptr.vmem [resolvable:$true] %s21_s11 }
  0x15   :  { %20 = dma.vmem_to_smem %s18_s29, 32, %s2259_s0, [#allocation5] }
  0x16   :  { %s25_s14 = sshll.u32 %s2551_s3, 4  ;;  %s2128_s15 = scalar_lea.vmem %s22_s11, 32  ;;  %s26_s14 = int_to_ptr.vmem [resolvable:$true] %s25_s14 }
  0x17   :  { %p2129_p10 = scmp.ne.s32.totalorder %s22_s11, %s2128_s15  ;;  %p2133_p11 = scmp.lt.s32.totalorder %s22_s11, %s22_s11 }
  0x18   :  { %p2134_p12 = scmp.lt.s32.totalorder %s2128_s15, %s2128_s15 }
  0x1a   :  { %p2135_p13 = por %p2134_p12, %p2133_p11 }
  0x1c   :  { %p2136_p0 = pnand %p2135_p13, %p2129_p10 }
  0x1e   :  { %2139 = shalt.err (!%p2136_p0)  }
  0x1f   :  { %s2260_s16 = smov [#allocation8]   ;;  %s2140_s17 = scalar_lea.vmem %s26_s14, 32 }
  0x20   :  { %24 = dma.vmem_to_smem %s22_s11, 32, %s2260_s16, [#allocation5] }
  0x21   :  { %p2141_p1 = scmp.ne.s32.totalorder %s26_s14, %s2140_s17  ;;  %p2145_p2 = scmp.lt.s32.totalorder %s26_s14, %s26_s14 }
  0x22   :  { %p2146_p3 = scmp.lt.s32.totalorder %s2140_s17, %s2140_s17 }
  0x24   :  { %p2147_p4 = por %p2146_p3, %p2145_p2 }
  0x26   :  { %p2148_p5 = pnand %p2147_p4, %p2141_p1 }
  0x28   :  { %2151 = shalt.err (!%p2148_p5)  }
  0x29   :  { %s2261_s2 = smov [#allocation9]  }
  0x2a   :  { %28 = dma.vmem_to_smem %s26_s14, 32, %s2261_s2, [#allocation5] }
  0x2b   :  { %2192 = dma.done.wait [#allocation5], 128 }
  0x2c   :  { %2193 = vsyncadd [#allocation5], 4294967168 }
  0x2d   :  { %30 = sfence }
  0x2e   :  { %31 = vsyncpa [#allocation11], 0 }
  0x2f   :  { %33 = vsyncpa [#allocation11 + $0x1], 0  ;;  %s2318_s3 = smov 0   ;;  %s2320_s18 = smov 0  }
  0x30   :  { %s2322_s19 = smov 0  }
  0x31 LB: > { %s1976_s20 = sadd.s32 4294967295, %s2256_s19   ;;  %s2335_s21 = sadd.s32 1, %s2256_s19   ;;  %s2256_s19 = sphi %s2322_s19, %s2556_s19   ;;  %s2252_s18 = sphi %s2320_s18, %s2555_s18   ;;  %s2248_s3 = sphi %s2318_s3, %s2554_s3  }
  0x32   : > { %s42_s22 = ssub.s32 %s2256_s19, %s2335_s21  ;;  %s45_s23 = sadd.s32 1, %s2252_s18 }
  0x33   : > { %p43_p6 = scmp.eq.s32.totalorder %s42_s22, 0  ;;  %p1977_p7 = scmp.ne.s32.totalorder %s42_s22, 0 }
  0x34   : > { %p49_p8 = scmp.eq.s32.totalorder %s2256_s19, 1  ;;  %p54_p9 = scmp.ne.s32.totalorder %s2252_s18, %s2248_s3 }
  0x35   : > { %s2344_s24 = scalar_select %p43_p6, %s2252_s18, %s45_s23  }
  0x36   : > { %p2346_p10 = por %p1977_p7, %p49_p8  ;;  %p55_p11 = scmp.eq.s32.totalorder %s1976_s20, 1 }
  0x37   : > { %p1978_p13 = scmp.ge.s32.totalorder %s2256_s19, 2 }
  0x38   : > { %p2350_p12 = por %p55_p11, %p54_p9  ;;  %s69_s27 = sand.u32 (!%p1978_p13), 1, %s2252_s18  }
  0x39   : > { %64 = sbr.rel (%p1978_p13) target bundleno = 786 (0x312), region = 12  ;;  %s2357_s28 = sshll.u32 (!%p1978_p13), %s2256_s19, 7 }
  0x3a   : > { %s2361_s29 = sshll.u32 (!%p1978_p13), %s69_s27, 3  ;;  %s73_s30 = sld [smem:[#allocation6 + %s2357_s28]] (!%p1978_p13) }
  0x3b   : > { %s74_s8 = sld [smem:[#allocation7 + %s2357_s28]] (!%p1978_p13)  ;;  %s71_s9 = scalar_lea.vmem (!%p1978_p13), [#allocation10], %s2361_s29 }
  0x41   : > { %p1981_p0 = scmp.ne.s32.totalorder %s74_s8, 1 }
  0x42   : > { %s79_s10 = scalar_lea.vmem (!%p1981_p0), %s2546_s5, %s73_s30 }
  0x43   : > { %78 = sbr.rel (%p1981_p0) target bundleno = 75 (0x4b), region = 16  ;;  %v97_v0 = vld [vmem:[%s79_s10] sm:$0x1] (!%p1981_p0) }
  0x44   : > { %98 = vst [vmem:[#allocation2] sm:$0x1] (!%p1981_p0), %v97_v0 }
  0x4a   : > { %123 = vsyncadd [#allocation3], 16 }
  0x4b PF: > { %s124_s11 = sld [smem:[#allocation7 + %s2357_s28]] }
  0x51   : > { %p1982_p1 = scmp.ne.s32.totalorder %s124_s11, 0 }
  0x52   : > { %s129_s14 = scalar_lea.vmem (!%p1982_p1), %s2545_s4, %s73_s30 }
  0x53   : > { %128 = sbr.rel (%p1982_p1) target bundleno = 91 (0x5b), region = 50  ;;  %v147_v1 = vld [vmem:[%s129_s14] sm:$0x1] (!%p1982_p1) }
  0x54   : > { %148 = vst [vmem:[#allocation2] sm:$0x1] (!%p1982_p1), %v147_v1 }
  0x5a   : > { %173 = vsyncadd [#allocation3], 16 }
  0x5b PF: > { %s2374_s15 = sadd.s32 1, %s2357_s28 }
  0x5c   : > { %s175_s16 = sld [smem:[#allocation6 + %s2374_s15]] }
  0x5d   : > { %s176_s17 = sld [smem:[#allocation7 + %s2374_s15]] }
  0x63   : > { %p1983_p2 = scmp.ne.s32.totalorder %s176_s17, 1 }
  0x64   : > { %s181_s22 = scalar_lea.vmem (!%p1983_p2), %s2546_s5, %s175_s16 }
  0x65   : > { %180 = sbr.rel (%p1983_p2) target bundleno = 109 (0x6d), region = 84  ;;  %v201_v2 = vld [vmem:[%s181_s22] sm:$0x1] (!%p1983_p2) }
  0x66   : > { %202 = vst [vmem:[#allocation2 + $0x1] sm:$0x1] (!%p1983_p2), %v201_v2 }
  0x6c   : > { %227 = vsyncadd [#allocation3 + $0x1], 16 }
  0x6d PF: > { %s228_s23 = sld [smem:[#allocation7 + %s2374_s15]] }
  0x73   : > { %p1984_p3 = scmp.ne.s32.totalorder %s228_s23, 0 }
  0x74   : > { %s233_s0 = scalar_lea.vmem (!%p1984_p3), %s2545_s4, %s175_s16 }
  0x75   : > { %232 = sbr.rel (%p1984_p3) target bundleno = 125 (0x7d), region = 118  ;;  %v253_v3 = vld [vmem:[%s233_s0] sm:$0x1] (!%p1984_p3) }
  0x76   : > { %254 = vst [vmem:[#allocation2 + $0x1] sm:$0x1] (!%p1984_p3), %v253_v3 }
  0x7c   : > { %279 = vsyncadd [#allocation3 + $0x1], 16 }
  0x7d PF: > { %s2386_s1 = sadd.s32 2, %s2357_s28 }
  0x7e   : > { %s281_s10 = sld [smem:[#allocation6 + %s2386_s1]] }
  0x7f   : > { %s282_s11 = sld [smem:[#allocation7 + %s2386_s1]] }
  0x85   : > { %p1985_p4 = scmp.ne.s32.totalorder %s282_s11, 1 }
  0x86   : > { %s287_s14 = scalar_lea.vmem (!%p1985_p4), %s2546_s5, %s281_s10 }
  0x87   : > { %286 = sbr.rel (%p1985_p4) target bundleno = 143 (0x8f), region = 152  ;;  %v307_v4 = vld [vmem:[%s287_s14] sm:$0x1] (!%p1985_p4) }
  0x88   : > { %308 = vst [vmem:[#allocation2 + $0x2] sm:$0x1] (!%p1985_p4), %v307_v4 }
  0x8e   : > { %333 = vsyncadd [#allocation3 + $0x2], 16 }
  0x8f PF: > { %s334_s16 = sld [smem:[#allocation7 + %s2386_s1]] }
  0x95   : > { %p1986_p5 = scmp.ne.s32.totalorder %s334_s16, 0 }
  0x96   : > { %s339_s20 = scalar_lea.vmem (!%p1986_p5), %s2545_s4, %s281_s10 }
  0x97   : > { %338 = sbr.rel (%p1986_p5) target bundleno = 159 (0x9f), region = 186  ;;  %v359_v5 = vld [vmem:[%s339_s20] sm:$0x1] (!%p1986_p5) }
  0x98   : > { %360 = vst [vmem:[#allocation2 + $0x2] sm:$0x1] (!%p1986_p5), %v359_v5 }
  0x9e   : > { %385 = vsyncadd [#allocation3 + $0x2], 16 }
  0x9f PF: > { %s2398_s22 = sadd.s32 3, %s2357_s28 }
  0xa0   : > { %s387_s23 = sld [smem:[#allocation6 + %s2398_s22]] }
  0xa1   : > { %s388_s30 = sld [smem:[#allocation7 + %s2398_s22]] }
  0xa7   : > { %p1987_p6 = scmp.ne.s32.totalorder %s388_s30, 1 }
  0xa8   : > { %s393_s11 = scalar_lea.vmem (!%p1987_p6), %s2546_s5, %s387_s23 }
  0xa9   : > { %392 = sbr.rel (%p1987_p6) target bundleno = 177 (0xb1), region = 220  ;;  %v413_v6 = vld [vmem:[%s393_s11] sm:$0x1] (!%p1987_p6) }
  0xaa   : > { %414 = vst [vmem:[#allocation2 + $0x3] sm:$0x1] (!%p1987_p6), %v413_v6 }
  0xb0   : > { %439 = vsyncadd [#allocation3 + $0x3], 16 }
  0xb1 PF: > { %s440_s10 = sld [smem:[#allocation7 + %s2398_s22]] }
  0xb7   : > { %p1988_p7 = scmp.ne.s32.totalorder %s440_s10, 0 }
  0xb8   : > { %s445_s14 = scalar_lea.vmem (!%p1988_p7), %s2545_s4, %s387_s23 }
  0xb9   : > { %444 = sbr.rel (%p1988_p7) target bundleno = 193 (0xc1), region = 254  ;;  %v465_v7 = vld [vmem:[%s445_s14] sm:$0x1] (!%p1988_p7) }
  0xba   : > { %466 = vst [vmem:[#allocation2 + $0x3] sm:$0x1] (!%p1988_p7), %v465_v7 }
  0xc0   : > { %491 = vsyncadd [#allocation3 + $0x3], 16 }
  0xc1 PF: > { %s2410_s16 = sadd.s32 4, %s2357_s28 }
  0xc2   : > { %s493_s17 = sld [smem:[#allocation6 + %s2410_s16]] }
  0xc3   : > { %s494_s2 = sld [smem:[#allocation7 + %s2410_s16]] }
  0xc9   : > { %p1989_p8 = scmp.ne.s32.totalorder %s494_s2, 1 }
  0xca   : > { %s499_s8 = scalar_lea.vmem (!%p1989_p8), %s2546_s5, %s493_s17 }
  0xcb   : > { %498 = sbr.rel (%p1989_p8) target bundleno = 211 (0xd3), region = 288  ;;  %v519_v8 = vld [vmem:[%s499_s8] sm:$0x1] (!%p1989_p8) }
  0xcc   : > { %520 = vst [vmem:[#allocation2 + $0x4] sm:$0x1] (!%p1989_p8), %v519_v8 }
  0xd2   : > { %545 = vsyncadd [#allocation3 + $0x4], 16 }
  0xd3 PF: > { %s546_s23 = sld [smem:[#allocation7 + %s2410_s16]] }
  0xd9   : > { %p1990_p9 = scmp.ne.s32.totalorder %s546_s23, 0 }
  0xda   : > { %s551_s10 = scalar_lea.vmem (!%p1990_p9), %s2545_s4, %s493_s17 }
  0xdb   : > { %550 = sbr.rel (%p1990_p9) target bundleno = 227 (0xe3), region = 322  ;;  %v571_v9 = vld [vmem:[%s551_s10] sm:$0x1] (!%p1990_p9) }
  0xdc   : > { %572 = vst [vmem:[#allocation2 + $0x4] sm:$0x1] (!%p1990_p9), %v571_v9 }
  0xe2   : > { %597 = vsyncadd [#allocation3 + $0x4], 16 }
  0xe3 PF: > { %s2422_s12 = sadd.s32 5, %s2357_s28 }
  0xe4   : > { %s599_s13 = sld [smem:[#allocation6 + %s2422_s12]] }
  0xe5   : > { %s600_s14 = sld [smem:[#allocation7 + %s2422_s12]] }
  0xeb   : > { %p1991_p11 = scmp.ne.s32.totalorder %s600_s14, 1 }
  0xec   : > { %s605_s30 = scalar_lea.vmem (!%p1991_p11), %s2546_s5, %s599_s13 }
  0xed   : > { %604 = sbr.rel (%p1991_p11) target bundleno = 245 (0xf5), region = 356  ;;  %v625_v10 = vld [vmem:[%s605_s30] sm:$0x1] (!%p1991_p11) }
  0xee   : > { %626 = vst [vmem:[#allocation2 + $0x5] sm:$0x1] (!%p1991_p11), %v625_v10 }
  0xf4   : > { %651 = vsyncadd [#allocation3 + $0x5], 16 }
  0xf5 PF: > { %s652_s17 = sld [smem:[#allocation7 + %s2422_s12]] }
  0xfb   : > { %p1992_p13 = scmp.ne.s32.totalorder %s652_s17, 0 }
  0xfc   : > { %s657_s0 = scalar_lea.vmem (!%p1992_p13), %s2545_s4, %s599_s13 }
  0xfd   : > { %656 = sbr.rel (%p1992_p13) target bundleno = 261 (0x105), region = 390  ;;  %v677_v11 = vld [vmem:[%s657_s0] sm:$0x1] (!%p1992_p13) }
  0xfe   : > { %678 = vst [vmem:[#allocation2 + $0x5] sm:$0x1] (!%p1992_p13), %v677_v11 }
 0x104   : > { %703 = vsyncadd [#allocation3 + $0x5], 16 }
 0x105 PF: > { %s2434_s11 = sadd.s32 6, %s2357_s28 }
 0x106   : > { %s705_s10 = sld [smem:[#allocation6 + %s2434_s11]] }
 0x107   : > { %s706_s14 = sld [smem:[#allocation7 + %s2434_s11]] }
 0x10d   : > { %p1993_p0 = scmp.ne.s32.totalorder %s706_s14, 1 }
 0x10e   : > { %s711_s30 = scalar_lea.vmem (!%p1993_p0), %s2546_s5, %s705_s10 }
 0x10f   : > { %710 = sbr.rel (%p1993_p0) target bundleno = 279 (0x117), region = 424  ;;  %v731_v12 = vld [vmem:[%s711_s30] sm:$0x1] (!%p1993_p0) }
 0x110   : > { %732 = vst [vmem:[#allocation2 + $0x6] sm:$0x1] (!%p1993_p0), %v731_v12 }
 0x116   : > { %757 = vsyncadd [#allocation3 + $0x6], 16 }
 0x117 PF: > { %s758_s13 = sld [smem:[#allocation7 + %s2434_s11]] }
 0x11d   : > { %p1994_p1 = scmp.ne.s32.totalorder %s758_s13, 0 }
 0x11e   : > { %s763_s23 = scalar_lea.vmem (!%p1994_p1), %s2545_s4, %s705_s10 }
 0x11f   : > { %762 = sbr.rel (%p1994_p1) target bundleno = 295 (0x127), region = 458  ;;  %v783_v13 = vld [vmem:[%s763_s23] sm:$0x1] (!%p1994_p1) }
 0x120   : > { %784 = vst [vmem:[#allocation2 + $0x6] sm:$0x1] (!%p1994_p1), %v783_v13 }
 0x126   : > { %809 = vsyncadd [#allocation3 + $0x6], 16 }
 0x127 PF: > { %s2446_s0 = sadd.s32 7, %s2357_s28 }
 0x128   : > { %s811_s14 = sld [smem:[#allocation6 + %s2446_s0]] }
 0x129   : > { %s812_s2 = sld [smem:[#allocation7 + %s2446_s0]] }
 0x12f   : > { %p1995_p2 = scmp.ne.s32.totalorder %s812_s2, 1 }
 0x130   : > { %s817_s13 = scalar_lea.vmem (!%p1995_p2), %s2546_s5, %s811_s14 }
 0x131   : > { %816 = sbr.rel (%p1995_p2) target bundleno = 313 (0x139), region = 492  ;;  %v837_v14 = vld [vmem:[%s817_s13] sm:$0x1] (!%p1995_p2) }
 0x132   : > { %838 = vst [vmem:[#allocation2 + $0x7] sm:$0x1] (!%p1995_p2), %v837_v14 }
 0x138   : > { %863 = vsyncadd [#allocation3 + $0x7], 16 }
 0x139 PF: > { %s864_s10 = sld [smem:[#allocation7 + %s2446_s0]] }
 0x13f   : > { %p1996_p3 = scmp.ne.s32.totalorder %s864_s10, 0 }
 0x140   : > { %s869_s23 = scalar_lea.vmem (!%p1996_p3), %s2545_s4, %s811_s14 }
 0x141   : > { %868 = sbr.rel (%p1996_p3) target bundleno = 329 (0x149), region = 526  ;;  %v889_v15 = vld [vmem:[%s869_s23] sm:$0x1] (!%p1996_p3) }
 0x142   : > { %890 = vst [vmem:[#allocation2 + $0x7] sm:$0x1] (!%p1996_p3), %v889_v15 }
 0x148   : > { %915 = vsyncadd [#allocation3 + $0x7], 16 }
 0x149 PF: > { %2194 = dma.done.wait [#allocation3], 16 }
 0x14a   : > { %2195 = vsyncadd [#allocation3], 4294967280  ;;  %s919_s2 = sld [smem:[#allocation8 + %s2357_s28]] }
 0x150   : > { %p1997_p4 = scmp.lt.s32.totalorder %s919_s2, 0 }
 0x151   : > { %s924_s13 = scalar_lea.vmem (!%p1997_p4), %s2547_s6, %s919_s2  ;;  %v942_v16 = vld [vmem:[#allocation2] sm:$0x1] (!%p1997_p4) }
 0x152   : > { %923 = sbr.rel (%p1997_p4) target bundleno = 346 (0x15a), region = 560  ;;  %943 = vst [vmem:[%s924_s13] sm:$0x1] (!%p1997_p4), %v942_v16 }
 0x159   : > { %968 = vsyncadd [#allocation4], 16 }
 0x15a PF: > { %2196 = dma.done.wait [#allocation3 + $0x1], 16 }
 0x15b   : > { %2197 = vsyncadd [#allocation3 + $0x1], 4294967280  ;;  %s973_s14 = sld [smem:[#allocation8 + %s2374_s15]] }
 0x161   : > { %p1998_p5 = scmp.lt.s32.totalorder %s973_s14, 0 }
 0x162   : > { %s978_s8 = scalar_lea.vmem (!%p1998_p5), %s2547_s6, %s973_s14  ;;  %v997_v17 = vld [vmem:[#allocation2 + $0x1] sm:$0x1] (!%p1998_p5) }
 0x163   : > { %977 = sbr.rel (%p1998_p5) target bundleno = 363 (0x16b), region = 594  ;;  %998 = vst [vmem:[%s978_s8] sm:$0x1] (!%p1998_p5), %v997_v17 }
 0x16a   : > { %1023 = vsyncadd [#allocation4 + $0x1], 16 }
 0x16b PF: > { %2198 = dma.done.wait [#allocation3 + $0x2], 16 }
 0x16c   : > { %2199 = vsyncadd [#allocation3 + $0x2], 4294967280  ;;  %s1028_s23 = sld [smem:[#allocation8 + %s2386_s1]] }
 0x172   : > { %p1999_p6 = scmp.lt.s32.totalorder %s1028_s23, 0 }
 0x173   : > { %s1033_s30 = scalar_lea.vmem (!%p1999_p6), %s2547_s6, %s1028_s23  ;;  %v1052_v18 = vld [vmem:[#allocation2 + $0x2] sm:$0x1] (!%p1999_p6) }
 0x174   : > { %1032 = sbr.rel (%p1999_p6) target bundleno = 380 (0x17c), region = 628  ;;  %1053 = vst [vmem:[%s1033_s30] sm:$0x1] (!%p1999_p6), %v1052_v18 }
 0x17b   : > { %1078 = vsyncadd [#allocation4 + $0x2], 16 }
 0x17c PF: > { %2200 = dma.done.wait [#allocation3 + $0x3], 16 }
 0x17d   : > { %2201 = vsyncadd [#allocation3 + $0x3], 4294967280  ;;  %s1083_s13 = sld [smem:[#allocation8 + %s2398_s22]] }
 0x183   : > { %p2000_p7 = scmp.lt.s32.totalorder %s1083_s13, 0 }
 0x184   : > { %s1088_s17 = scalar_lea.vmem (!%p2000_p7), %s2547_s6, %s1083_s13  ;;  %v1107_v19 = vld [vmem:[#allocation2 + $0x3] sm:$0x1] (!%p2000_p7) }
 0x185   : > { %1087 = sbr.rel (%p2000_p7) target bundleno = 397 (0x18d), region = 662  ;;  %1108 = vst [vmem:[%s1088_s17] sm:$0x1] (!%p2000_p7), %v1107_v19 }
 0x18c   : > { %1133 = vsyncadd [#allocation4 + $0x3], 16 }
 0x18d PF: > { %2202 = dma.done.wait [#allocation3 + $0x4], 16 }
 0x18e   : > { %2203 = vsyncadd [#allocation3 + $0x4], 4294967280  ;;  %s1138_s8 = sld [smem:[#allocation8 + %s2410_s16]] }
 0x194   : > { %p2001_p8 = scmp.lt.s32.totalorder %s1138_s8, 0 }
 0x195   : > { %s1143_s20 = scalar_lea.vmem (!%p2001_p8), %s2547_s6, %s1138_s8  ;;  %v1162_v20 = vld [vmem:[#allocation2 + $0x4] sm:$0x1] (!%p2001_p8) }
 0x196   : > { %1142 = sbr.rel (%p2001_p8) target bundleno = 414 (0x19e), region = 696  ;;  %1163 = vst [vmem:[%s1143_s20] sm:$0x1] (!%p2001_p8), %v1162_v20 }
 0x19d   : > { %1188 = vsyncadd [#allocation4 + $0x4], 16 }
 0x19e PF: > { %2204 = dma.done.wait [#allocation3 + $0x5], 16 }
 0x19f   : > { %2205 = vsyncadd [#allocation3 + $0x5], 4294967280  ;;  %s1193_s30 = sld [smem:[#allocation8 + %s2422_s12]] }
 0x1a5   : > { %p2002_p9 = scmp.lt.s32.totalorder %s1193_s30, 0 }
 0x1a6   : > { %s1198_s10 = scalar_lea.vmem (!%p2002_p9), %s2547_s6, %s1193_s30  ;;  %v1217_v21 = vld [vmem:[#allocation2 + $0x5] sm:$0x1] (!%p2002_p9) }
 0x1a7   : > { %1197 = sbr.rel (%p2002_p9) target bundleno = 431 (0x1af), region = 730  ;;  %1218 = vst [vmem:[%s1198_s10] sm:$0x1] (!%p2002_p9), %v1217_v21 }
 0x1ae   : > { %1243 = vsyncadd [#allocation4 + $0x5], 16 }
 0x1af PF: > { %2206 = dma.done.wait [#allocation3 + $0x6], 16 }
 0x1b0   : > { %2207 = vsyncadd [#allocation3 + $0x6], 4294967280  ;;  %s1248_s17 = sld [smem:[#allocation8 + %s2434_s11]] }
 0x1b6   : > { %p2003_p11 = scmp.lt.s32.totalorder %s1248_s17, 0 }
 0x1b7   : > { %s1253_s2 = scalar_lea.vmem (!%p2003_p11), %s2547_s6, %s1248_s17  ;;  %v1272_v22 = vld [vmem:[#allocation2 + $0x6] sm:$0x1] (!%p2003_p11) }
 0x1b8   : > { %1252 = sbr.rel (%p2003_p11) target bundleno = 448 (0x1c0), region = 764  ;;  %1273 = vst [vmem:[%s1253_s2] sm:$0x1] (!%p2003_p11), %v1272_v22 }
 0x1bf   : > { %1298 = vsyncadd [#allocation4 + $0x6], 16 }
 0x1c0 PF: > { %2208 = dma.done.wait [#allocation3 + $0x7], 16 }
 0x1c1   : > { %2209 = vsyncadd [#allocation3 + $0x7], 4294967280  ;;  %s1303_s20 = sld [smem:[#allocation8 + %s2446_s0]] }
 0x1c7   : > { %p2004_p13 = scmp.lt.s32.totalorder %s1303_s20, 0 }
 0x1c8   : > { %s1308_s14 = scalar_lea.vmem (!%p2004_p13), %s2547_s6, %s1303_s20  ;;  %v1327_v23 = vld [vmem:[#allocation2 + $0x7] sm:$0x1] (!%p2004_p13) }
 0x1c9   : > { %1307 = sbr.rel (%p2004_p13) target bundleno = 465 (0x1d1), region = 798  ;;  %1328 = vst [vmem:[%s1308_s14] sm:$0x1] (!%p2004_p13), %v1327_v23 }
 0x1d0   : > { %1353 = vsyncadd [#allocation4 + $0x7], 16 }
 0x1d1 PF: > { %v1385_v24 = vld [vmem:[#allocation2] sm:$0xff]  ;;  %v1354_v25 = vlaneseq  ;;  %s1356_s10 = sld [smem:[#allocation9 + %s2357_s28]]  ;;  %v2262_v26 = vmov 0.0   ;;  %vm2263_vm0 = vmmov 0   ;;  %v2264_v32 = vmov 0  }
 0x1d2   : > { %s1361_s17 = sld [smem:[#allocation9 + %s2374_s15]]  ;;  %2037 = vmatprep.subr.mxu0 %v2262_v26  ;;  %2039 = vmatprep.mubr.msk.f32.mxu0 %vm2263_vm0, %v2262_v26  ;;  %vm1386_vm7 = vcmask 64512  }
 0x1d3   : > { %s1366_s8 = sld [smem:[#allocation9 + %s2386_s1]]  ;;  %2038 = vmatpush3.msra.mxu0 %v1385_v24  ;;  %v1355_v27 = vand.u32 127, %v1354_v25  ;;  %v1378_v40 = vshrl.u32 %v1354_v25, 7 }
 0x1d4   : > { %s1371_s23 = sld [smem:[#allocation9 + %s2398_s22]] }
 0x1d5   : > { %vm1376_vm5 = vcmp.lt.s32.totalorder %v1355_v27, 8  ;;  %s1461_s2 = sld [smem:[#allocation8 + %s2357_s28]] }
 0x1d7   : > { %v1357_v28 = vstv %s1356_s10 }
 0x1d8   : > { %v1362_v29 = vstv %s1361_s17  ;;  %vm1358_vm1 = vcmp.ge.s32.totalorder %v1355_v27, %v1357_v28 }
 0x1d9   : > { %vm1363_vm2 = vcmp.ge.s32.totalorder %v1355_v27, %v1362_v29  ;;  %v1367_v30 = vstv %s1366_s8  ;;  %v1359_v33 = vsel %vm1358_vm1, 1, %v2264_v32 }
 0x1da   : > { %v1372_v31 = vstv %s1371_s23  ;;  %v1364_v34 = vsel %vm1363_vm2, 1, %v2264_v32  ;;  %vm1368_vm3 = vcmp.ge.s32.totalorder %v1355_v27, %v1367_v30  ;;  %v1360_v35 = vadd.s32 4294967295, %v1359_v33 }
 0x1db   : > { %vm1373_vm4 = vcmp.ge.s32.totalorder %v1355_v27, %v1372_v31  ;;  %v1369_v36 = vsel %vm1368_vm3, 1, %v2264_v32  ;;  %p2064_p0 = scmp.ge.s32.totalorder %s1461_s2, 0 }
 0x1dc   : > { %v1365_v37 = vadd.s32 %v1364_v34, %v1360_v35  ;;  %v1374_v38 = vsel %vm1373_vm4, 1, %v2264_v32 }
 0x1de   : > { %v1370_v39 = vadd.s32 %v1369_v36, %v1365_v37 }
 0x1e0   : > { %v1375_v41 = vadd.s32 %v1374_v38, %v1370_v39 }
 0x1e2   : > { %vm1379_vm6 = vcmp.eq.s32.totalorder %v1375_v41, %v1378_v40 }
 0x1e3   : > { %vm1382_vm8 = vmand %vm1379_vm6, %vm1376_vm5 }
 0x1e4   : > { %v2005_v42 = vsel %vm1382_vm8, 1.0, %v2262_v26 }
 0x1e5   : > { %2040 = vmatmul.mubr.msk.f32.vlgmr.msra.gmra.mrb[0].mxu0 %vm1386_vm7, %v2005_v42 }
 0x2b8   : > { %v1456_v43 = vpop.f32.mrb[0].mxu0 }
 0x2b9   : > { %1460 = vst [vmem:[%s71_s9] sm:$0xff] %v1456_v43  ;;  %v2041_v44 = vpop.f32.mrb[1].mxu0 }
 0x2ba   : > { %2211 = dma.done.wait (%p2064_p0), [#allocation4], 16 }
 0x2bb   : > { %2213 = vsyncadd (%p2064_p0), [#allocation4], 4294967280  ;;  %s1468_s20 = sld [smem:[#allocation8 + %s2374_s15]] }
 0x2c1   : > { %p2065_p1 = scmp.ge.s32.totalorder %s1468_s20, 0 }
 0x2c3   : > { %2215 = dma.done.wait (%p2065_p1), [#allocation4 + $0x1], 16 }
 0x2c4   : > { %2217 = vsyncadd (%p2065_p1), [#allocation4 + $0x1], 4294967280  ;;  %s1476_s30 = sld [smem:[#allocation8 + %s2386_s1]] }
 0x2ca   : > { %p2066_p2 = scmp.ge.s32.totalorder %s1476_s30, 0 }
 0x2cc   : > { %2219 = dma.done.wait (%p2066_p2), [#allocation4 + $0x2], 16 }
 0x2cd   : > { %2221 = vsyncadd (%p2066_p2), [#allocation4 + $0x2], 4294967280  ;;  %s1484_s13 = sld [smem:[#allocation8 + %s2398_s22]] }
 0x2d3   : > { %p2067_p3 = scmp.ge.s32.totalorder %s1484_s13, 0 }
 0x2d5   : > { %2223 = dma.done.wait (%p2067_p3), [#allocation4 + $0x3], 16 }
 0x2d6   : > { %2225 = vsyncadd (%p2067_p3), [#allocation4 + $0x3], 4294967280  ;;  %s1492_s14 = sld [smem:[#allocation8 + %s2410_s16]] }
 0x2dc   : > { %p2068_p4 = scmp.ge.s32.totalorder %s1492_s14, 0 }
 0x2de   : > { %2227 = dma.done.wait (%p2068_p4), [#allocation4 + $0x4], 16 }
 0x2df   : > { %2229 = vsyncadd (%p2068_p4), [#allocation4 + $0x4], 4294967280  ;;  %s1500_s15 = sld [smem:[#allocation8 + %s2422_s12]] }
 0x2e5   : > { %p2069_p5 = scmp.ge.s32.totalorder %s1500_s15, 0 }
 0x2e7   : > { %2231 = dma.done.wait (%p2069_p5), [#allocation4 + $0x5], 16 }
 0x2e8   : > { %2233 = vsyncadd (%p2069_p5), [#allocation4 + $0x5], 4294967280  ;;  %s1508_s1 = sld [smem:[#allocation8 + %s2434_s11]] }
 0x2ee   : > { %p2070_p6 = scmp.ge.s32.totalorder %s1508_s1, 0 }
 0x2f0   : > { %2235 = dma.done.wait (%p2070_p6), [#allocation4 + $0x6], 16 }
 0x2f1   : > { %2237 = vsyncadd (%p2070_p6), [#allocation4 + $0x6], 4294967280  ;;  %s1516_s22 = sld [smem:[#allocation8 + %s2446_s0]] }
 0x2f7   : > { %p2071_p7 = scmp.ge.s32.totalorder %s1516_s22, 0 }
 0x2f9   : > { %2239 = dma.done.wait (%p2071_p7), [#allocation4 + $0x7], 16 }
 0x2fa   : > { %2241 = vsyncadd (%p2071_p7), [#allocation4 + $0x7], 4294967280  ;;  %s2507_s12 = scalar_lea.hbm %s2548_s7, %s2357_s28  ;;  %s1538_s17 = sshll.u32 %s71_s9, 4  ;;  %s1539_s17 = int_to_ptr.vmem [resolvable:$true] %s1538_s17 }
 0x2fb   : > { %s1525_s11 = scalar_lea.sflag [#allocation11], %s69_s27  ;;  %s2152_s8 = scalar_lea.vmem %s1539_s17, 128 }
 0x2fc   : > { %p2153_p8 = scmp.ne.s32.totalorder %s1539_s17, %s2152_s8  ;;  %s2265_s0 = smov [#allocation10]  }
 0x2fd   : > { %s2156_s23 = sshll.u32 %s2265_s0, 4  ;;  %s2157_s23 = int_to_ptr.vmem [resolvable:$false] %s2156_s23 }
 0x2fe   : > { %p2154_p9 = pnand %p2153_p8, %p2346_p10  ;;  %s2158_s2 = scalar_lea.vmem %s2157_s23, 256 }
 0x2ff   : > { %p2159_p13 = scmp.lt.s32.totalorder %s1539_s17, %s2157_s23  ;;  %p2160_p0 = scmp.lt.s32.totalorder %s2158_s2, %s2152_s8 }
 0x300   : > { %p2155_p11 = pneg %p2154_p9 }
 0x301   : > { %p2161_p1 = por %p2160_p0, %p2159_p13 }
 0x303   : > { %p2162_p2 = pnand %p2161_p1, %p2155_p11 }
 0x305   : > { %2165 = shalt.err (!%p2162_p2)
}
 0x306   : > { %s2166_s27 = scalar_lea.hbm %s2507_s12, 128  ;;  %s2170_s9 = scalar_lea.hbm %s2548_s7, 256 }
 0x307   : > { %p2167_p3 = scmp.ne.s32.totalorder %s2507_s12, %s2166_s27  ;;  %p2171_p6 = scmp.lt.u32.totalorder %s2507_s12, %s2548_s7 }
 0x308   : > { %p2172_p7 = scmp.lt.u32.totalorder %s2170_s9, %s2166_s27  ;;  %p2174_p9 = scmp.lt.u32.totalorder %s2166_s27, %s2507_s12 }
 0x309   : > { %p2168_p4 = pnand %p2167_p3, %p2346_p10 }
 0x30a   : > { %p2173_p8 = por %p2172_p7, %p2171_p6 }
 0x30b   : > { %p2169_p5 = pneg %p2168_p4 }
 0x30c   : > { %p2175_p11 = por %p2174_p9, %p2173_p8 }
 0x30e   : > { %p2176_p13 = pnand %p2175_p11, %p2169_p5 }
 0x310   : > { %2179 = shalt.err (!%p2176_p13)
}
 0x311   : > { %2058 = dma.vmem_to_hbm [thread:$0]  (%p2346_p10), %s1539_s17, 128, %s2507_s12, %s1525_s11  }
 0x312 PF: > { %p2072_p0 = scmp.ge.s32.totalorder %s2256_s19, 1  ;;  %s1550_s13 = sand.u32 1, %s2248_s3  }
 0x313   : > { %s1551_s14 = scalar_lea.sflag [#allocation11], %s1550_s13 }
 0x314   : > { %p2061_p1 = pnand %p2072_p0, %p2350_p12 }
 0x316   : > { %2243 = dma.done.wait (!%p2061_p1), %s1551_s14, 128  }
 0x317   : > { %2245 = vsyncadd (!%p2061_p1), %s1551_s14, 4294967168  ;;  %p36_p2 = scmp.ge.s32.totalorder %s2335_s21, 3   ;;  %s2554_s3 = smov %s2252_s18 }
 0x318   : > { %s2555_s18 = smov %s2344_s24  ;;  %s2556_s19 = smov %s2335_s21 }
 0x319   :  { %38 = sbr.rel (!%p36_p2) target bundleno = 49 (0x31), region = 1226 }
 0x320   :  { %1556 = vsyncpa [#allocation11], 1 }
 0x321   :  { %1558 = vsyncpa [#allocation11 + $0x1], 1 }
 0x322   :  { %1559 = vsyncmov [#allocation3] }
 0x325   :  { %s1560_s19 = vpop.sfrf %1559 }
 0x326   :  { %p2019_p10 = scmp.ne.s32.totalorder %s1560_s19, 0 }
 0x328   :  { %1564 = shalt.err (%p2019_p10)  }
 0x329   :  { %1566 = vsyncmov [#allocation3 + $0x1] }
 0x32c   :  { %s1567_s25 = vpop.sfrf %1566 }
 0x32d   :  { %p2020_p12 = scmp.ne.s32.totalorder %s1567_s25, 0 }
 0x32f   :  { %1571 = shalt.err (%p2020_p12)  }
 0x330   :  { %1573 = vsyncmov [#allocation3 + $0x2] }
 0x333   :  { %s1574_s26 = vpop.sfrf %1573 }
 0x334   :  { %p2021_p3 = scmp.ne.s32.totalorder %s1574_s26, 0 }
 0x336   :  { %1578 = shalt.err (%p2021_p3)  }
 0x337   :  { %1580 = vsyncmov [#allocation3 + $0x3] }
 0x33a   :  { %s1581_s15 = vpop.sfrf %1580 }
 0x33b   :  { %p2022_p4 = scmp.ne.s32.totalorder %s1581_s15, 0 }
 0x33d   :  { %1585 = shalt.err (%p2022_p4)  }
 0x33e   :  { %1587 = vsyncmov [#allocation3 + $0x4] }
 0x341   :  { %s1588_s21 = vpop.sfrf %1587 }
 0x342   :  { %p2023_p5 = scmp.ne.s32.totalorder %s1588_s21, 0 }
 0x344   :  { %1592 = shalt.err (%p2023_p5)  }
 0x345   :  { %1594 = vsyncmov [#allocation3 + $0x5] }
 0x348   :  { %s1595_s4 = vpop.sfrf %1594 }
 0x349   :  { %p2024_p6 = scmp.ne.s32.totalorder %s1595_s4, 0 }
 0x34b   :  { %1599 = shalt.err (%p2024_p6)  }
 0x34c   :  { %1601 = vsyncmov [#allocation3 + $0x6] }
 0x34f   :  { %s1602_s5 = vpop.sfrf %1601 }
 0x350   :  { %p2025_p7 = scmp.ne.s32.totalorder %s1602_s5, 0 }
 0x352   :  { %1606 = shalt.err (%p2025_p7)  }
 0x353   :  { %1608 = vsyncmov [#allocation3 + $0x7] }
 0x356   :  { %s1609_s6 = vpop.sfrf %1608 }
 0x357   :  { %p2026_p8 = scmp.ne.s32.totalorder %s1609_s6, 0 }
 0x359   :  { %1613 = shalt.err (%p2026_p8)  }
 0x35a   :  { %1614 = vsyncmov [#allocation4] }
 0x35d   :  { %s1615_s7 = vpop.sfrf %1614 }
 0x35e   :  { %p2027_p9 = scmp.ne.s32.totalorder %s1615_s7, 0 }
 0x360   :  { %1619 = shalt.err (%p2027_p9)  }
 0x361   :  { %1621 = vsyncmov [#allocation4 + $0x1] }
 0x364   :  { %s1622_s3 = vpop.sfrf %1621 }
 0x365   :  { %p2028_p11 = scmp.ne.s32.totalorder %s1622_s3, 0 }
 0x367   :  { %1626 = shalt.err (%p2028_p11)  }
 0x368   :  { %1628 = vsyncmov [#allocation4 + $0x2] }
 0x36b   :  { %s1629_s18 = vpop.sfrf %1628 }
 0x36c   :  { %p2029_p13 = scmp.ne.s32.totalorder %s1629_s18, 0 }
 0x36e   :  { %1633 = shalt.err (%p2029_p13)  }
 0x36f   :  { %1635 = vsyncmov [#allocation4 + $0x3] }
 0x372   :  { %s1636_s24 = vpop.sfrf %1635 }
 0x373   :  { %p2030_p0 = scmp.ne.s32.totalorder %s1636_s24, 0 }
 0x375   :  { %1640 = shalt.err (%p2030_p0)  }
 0x376   :  { %1642 = vsyncmov [#allocation4 + $0x4] }
 0x379   :  { %s1643_s1 = vpop.sfrf %1642 }
 0x37a   :  { %p2031_p1 = scmp.ne.s32.totalorder %s1643_s1, 0 }
 0x37c   :  { %1647 = shalt.err (%p2031_p1)  }
 0x37d   :  { %1649 = vsyncmov [#allocation4 + $0x5] }
 0x380   :  { %s1650_s22 = vpop.sfrf %1649 }
 0x381   :  { %p2032_p2 = scmp.ne.s32.totalorder %s1650_s22, 0 }
 0x383   :  { %1654 = shalt.err (%p2032_p2)  }
 0x384   :  { %1656 = vsyncmov [#allocation4 + $0x6] }
 0x387   :  { %s1657_s16 = vpop.sfrf %1656 }
 0x388   :  { %p2033_p10 = scmp.ne.s32.totalorder %s1657_s16, 0 }
 0x38a   :  { %1661 = shalt.err (%p2033_p10)  }
 0x38b   :  { %1663 = vsyncmov [#allocation4 + $0x7] }
 0x38e   :  { %s1664_s10 = vpop.sfrf %1663 }
 0x38f   :  { %p2034_p12 = scmp.ne.s32.totalorder %s1664_s10, 0 }
 0x391   :  { %1668 = shalt.err (%p2034_p12)  }

</bundles_post_ra>
